<compile_context>
chip_gen: v6e
topology: v6e:2x2x1
jax: 0.10.0
libtpu: 0.0.40
codegen_flags: <defaults>
</compile_context>

<pallas_src>
import functools

import jax
import jax.numpy as jnp
from jax.experimental import pallas as pl
from jax.experimental.pallas import tpu as pltpu

_VMEM_LIMIT = 32 * 1024 * 1024


# ---------------------------------------------------------------------------
# tile-size helpers (tiles must divide the dim and respect the (8,128) rule)
# ---------------------------------------------------------------------------
def _pick_row_tile(m, target=512):
    t0 = min(m, target)
    for t in range(t0, 0, -1):
        if m % t == 0 and (t % 8 == 0 or t == m):
            return t
    return m  # TODO(synk): pad M for pathological sizes with no aligned divisor


def _pick_k_tile(k, target=512):
    if k <= target:
        return k
    for t in range(target - (target % 128), 127, -128):
        if k % t == 0:
            return t
    return k


def _pick_n_tile(cout):
    if cout % 256 == 0:
        return 256
    if cout % 128 == 0:
        return 128
    return cout


# ---------------------------------------------------------------------------
# Kernel A: tiled matmul (conv with taps folded into K) + fused BN scale/shift,
# optional residual add and optional ReLU epilogue.
# ---------------------------------------------------------------------------
def _conv_mm_kernel(*refs, apply_relu, has_residual):
    """3-D grid (M, N, K); K innermost reduction with f32 accumulator scratch."""
    if has_residual:
        x_ref, w_ref, scale_ref, shift_ref, res_ref, o_ref, acc_ref = refs
    else:
        x_ref, w_ref, scale_ref, shift_ref, o_ref, acc_ref = refs
        res_ref = None
    k = pl.program_id(2)

    @pl.when(k == 0)
    def _():
        acc_ref[...] = jnp.zeros_like(acc_ref)

    acc_ref[...] += jnp.dot(x_ref[...], w_ref[...],
                            preferred_element_type=jnp.float32)

    @pl.when(k == pl.num_programs(2) - 1)
    def _():
        y = acc_ref[...] * scale_ref[...] + shift_ref[...]
        if has_residual:
            y = y + res_ref[...].astype(jnp.float32)
        if apply_relu:
            y = jnp.maximum(y, 0.0)
        o_ref[...] = y.astype(o_ref.dtype)


def _conv_mm_kernel_single(*refs, apply_relu, has_residual):
    """2-D grid (M, N); whole K fits one tile -> no accumulator scratch."""
    if has_residual:
        x_ref, w_ref, scale_ref, shift_ref, res_ref, o_ref = refs
    else:
        x_ref, w_ref, scale_ref, shift_ref, o_ref = refs
        res_ref = None
    y = jnp.dot(x_ref[...], w_ref[...], preferred_element_type=jnp.float32)
    y = y * scale_ref[...] + shift_ref[...]
    if has_residual:
        y = y + res_ref[...].astype(jnp.float32)
    if apply_relu:
        y = jnp.maximum(y, 0.0)
    o_ref[...] = y.astype(o_ref.dtype)


def _matmul_bn(x, w, scale, shift, *, relu, residual=None,
               out_dtype=jnp.float32):
    """x: (M, K) bf16, w: (K, Cout) bf16 -> (M, Cout) out_dtype, fused epilogue."""
    M, K = x.shape
    Cout = w.shape[1]
    tm = _pick_row_tile(M, 512)
    tn = _pick_n_tile(Cout)
    tk = _pick_k_tile(K, 512)
    nk = K // tk
    has_res = residual is not None

    args = [x, w, scale.reshape(1, Cout), shift.reshape(1, Cout)]
    if has_res:
        args.append(residual)

    if nk == 1:
        in_specs = [
            pl.BlockSpec((tm, K), lambda i, j: (i, 0)),
            pl.BlockSpec((K, tn), lambda i, j: (0, j)),
            pl.BlockSpec((1, tn), lambda i, j: (0, j)),
            pl.BlockSpec((1, tn), lambda i, j: (0, j)),
        ]
        if has_res:
            in_specs.append(pl.BlockSpec((tm, tn), lambda i, j: (i, j)))
        return pl.pallas_call(
            functools.partial(_conv_mm_kernel_single, apply_relu=relu,
                              has_residual=has_res),
            out_shape=jax.ShapeDtypeStruct((M, Cout), out_dtype),
            grid_spec=pltpu.PrefetchScalarGridSpec(
                num_scalar_prefetch=0,
                grid=(M // tm, Cout // tn),
                in_specs=in_specs,
                out_specs=pl.BlockSpec((tm, tn), lambda i, j: (i, j)),
            ),
            compiler_params=pltpu.CompilerParams(
                dimension_semantics=("parallel", "parallel"),
                vmem_limit_bytes=_VMEM_LIMIT),
        )(*args)

    in_specs = [
        pl.BlockSpec((tm, tk), lambda i, j, k: (i, k)),
        pl.BlockSpec((tk, tn), lambda i, j, k: (k, j)),
        pl.BlockSpec((1, tn), lambda i, j, k: (0, j)),
        pl.BlockSpec((1, tn), lambda i, j, k: (0, j)),
    ]
    if has_res:
        in_specs.append(pl.BlockSpec((tm, tn), lambda i, j, k: (i, j)))

    return pl.pallas_call(
        functools.partial(_conv_mm_kernel, apply_relu=relu,
                          has_residual=has_res),
        out_shape=jax.ShapeDtypeStruct((M, Cout), out_dtype),
        grid_spec=pltpu.PrefetchScalarGridSpec(
            num_scalar_prefetch=0,
            grid=(M // tm, Cout // tn, nk),
            in_specs=in_specs,
            out_specs=pl.BlockSpec((tm, tn), lambda i, j, k: (i, j)),
            scratch_shapes=[pltpu.VMEM((tm, tn), jnp.float32)],
        ),
        compiler_params=pltpu.CompilerParams(
            dimension_semantics=("parallel", "parallel", "arbitrary"),
            vmem_limit_bytes=_VMEM_LIMIT),
    )(*args)


def conv2d_bn(x, w, scale, shift, *, stride, padding, relu, residual=None,
              out_dtype=jnp.float32):
    """x: (N,H,W,Cin) NHWC, w: (KH,KW,Cin,Cout). Returns (N,Ho,Wo,Cout)."""
    N, H, W, Cin = x.shape
    KH, KW, _, Cout = w.shape
    Ho = (H + 2 * padding - KH) // stride + 1
    Wo = (W + 2 * padding - KW) // stride + 1
    M = N * Ho * Wo

    xb = x.astype(jnp.bfloat16)
    if KH == 1 and KW == 1 and padding == 0:
        patches = xb[:, ::stride, ::stride, :].reshape(M, Cin)
    else:
        xp = jnp.pad(xb, ((0, 0), (padding, padding), (padding, padding), (0, 0)))
        taps = []
        for kh in range(KH):
            for kw in range(KW):
                taps.append(jax.lax.slice(
                    xp, (0, kh, kw, 0),
                    (N, kh + (Ho - 1) * stride + 1,
                     kw + (Wo - 1) * stride + 1, Cin),
                    (1, stride, stride, 1)))
        # TODO(synk): the folded patch matrix is still materialized in HBM (bf16);
        # a halo-DMA kernel reading the padded input directly would remove it.
        patches = jnp.concatenate(taps, axis=-1).reshape(M, KH * KW * Cin)

    wmat = w.reshape(KH * KW * Cin, Cout).astype(jnp.bfloat16)
    res2d = None if residual is None else residual.reshape(M, Cout)
    out = _matmul_bn(patches, wmat, scale, shift, relu=relu, residual=res2d,
                     out_dtype=out_dtype)
    return out.reshape(N, Ho, Wo, Cout)


# ---------------------------------------------------------------------------
# Kernel B: fused dual depthwise strip conv (H and W direction) + offset add
# + biases, operating per image on (H, W*C) slabs (lane dim = W*C).
# ---------------------------------------------------------------------------
def _strip_sum_kernel(x_ref, wh_ref, ww_ref, b_ref, o_ref, *,
                      KH, KW, H, W, C, Ph, Pw):
    x = x_ref[...]                                    # (Hp, Wp*C) f32
    WC = W * C
    wh = wh_ref[...]                                  # (KH, WC)
    ww = ww_ref[...]                                  # (KW, WC)
    acc = jnp.zeros((H, WC), jnp.float32)

    # H-direction strip conv: fixed W window, taps shift along rows (cheap).
    xh = jax.lax.slice(x, (0, Pw * C), (x.shape[0], Pw * C + WC))   # (Hp, WC)
    for k in range(KH):
        acc = acc + xh[k:k + H, :] * wh[k, :]

    # W-direction strip conv: taps shift along lanes in multiples of C.
    xw = x[Ph:Ph + H, :]                              # (H, Wp*C)
    for k in range(KW):
        acc = acc + jax.lax.slice(xw, (0, k * C), (H, k * C + WC)) * ww[k, :]

    o_ref[...] = acc + b_ref[...]


# ---------------------------------------------------------------------------
# Kernel C: LayerNorm -> Linear(C,2C) -> GELU -> Linear(2C,C) -> sigmoid gate
# * strip-sum -> residual add with the block input.  Row-tiled; weights stay
# resident across row tiles.
# ---------------------------------------------------------------------------
def _ln_mlp_kernel(s_ref, inp_ref, g_ref, bt_ref, w1_ref, b1_ref,
                   w2_ref, b2_ref, o_ref):
    x = s_ref[...]                                    # (tm, C) pre-norm strip sum
    mu = jnp.mean(x, axis=-1, keepdims=True)
    var = jnp.mean(jnp.square(x - mu), axis=-1, keepdims=True)
    y = (x - mu) * jax.lax.rsqrt(var + 1e-6)
    y = y * g_ref[...] + bt_ref[...]
    h = jnp.dot(y.astype(jnp.bfloat16), w1_ref[...],
                preferred_element_type=jnp.float32) + b1_ref[...]
    # TODO(synk): PyTorch nn.GELU default is erf-exact; tanh approx used (EUP path).
    h = jax.nn.gelu(h, approximate=True)
    h = jnp.dot(h.astype(jnp.bfloat16), w2_ref[...],
                preferred_element_type=jnp.float32) + b2_ref[...]
    o_ref[...] = inp_ref[...] + jax.nn.sigmoid(h) * x   # Dropout2d(eval) == identity


def strip_conv_block(x, p):
    N, H, W, C = x.shape
    wH, wW = p['wH'], p['wW']                         # (KH, C), (KW, C)
    KH, KW = wH.shape[0], wW.shape[0]                 # KH = hdim (even), KW = 2*hdim
    Ph, Pw = KH // 2 - 1, KW // 2 - 1                 # includes the [:,1:] offsets
    Hp, Wp = H + KH - 1, W + KW - 1
    WC = W * C

    xpad = jnp.pad(x, ((0, 0), (Ph, KH // 2), (Pw, KW // 2), (0, 0)))
    xpad2 = xpad.reshape(N, Hp, Wp * C)

    # broadcast depthwise weights/bias across W so the kernel lane dim is W*C
    whf = jnp.tile(wH[:, None, :], (1, W, 1)).reshape(KH, WC)
    wwf = jnp.tile(wW[:, None, :], (1, W, 1)).reshape(KW, WC)
    bf = jnp.tile((p['bH'] + p['bW'])[None, :], (W, 1)).reshape(1, WC)

    s = pl.pallas_call(
        functools.partial(_strip_sum_kernel, KH=KH, KW=KW, H=H, W=W, C=C,
                          Ph=Ph, Pw=Pw),
        out_shape=jax.ShapeDtypeStruct((N, H, WC), jnp.float32),
        grid_spec=pltpu.PrefetchScalarGridSpec(
            num_scalar_prefetch=0,
            grid=(N,),
            in_specs=[
                pl.BlockSpec((None, Hp, Wp * C), lambda n: (n, 0, 0)),
                pl.BlockSpec((KH, WC), lambda n: (0, 0)),
                pl.BlockSpec((KW, WC), lambda n: (0, 0)),
                pl.BlockSpec((1, WC), lambda n: (0, 0)),
            ],
            out_specs=pl.BlockSpec((None, H, WC), lambda n: (n, 0, 0)),
        ),
        compiler_params=pltpu.CompilerParams(
            dimension_semantics=("parallel",),
            vmem_limit_bytes=_VMEM_LIMIT),
    )(xpad2, whf, wwf, bf)

    M = N * H * W
    tm = _pick_row_tile(M, 1024)
    C2 = 2 * C
    out = pl.pallas_call(
        _ln_mlp_kernel,
        out_shape=jax.ShapeDtypeStruct((M, C), jnp.float32),
        grid_spec=pltpu.PrefetchScalarGridSpec(
            num_scalar_prefetch=0,
            grid=(M // tm,),
            in_specs=[
                pl.BlockSpec((tm, C), lambda i: (i, 0)),
                pl.BlockSpec((tm, C), lambda i: (i, 0)),
                pl.BlockSpec((1, C), lambda i: (0, 0)),
                pl.BlockSpec((1, C), lambda i: (0, 0)),
                pl.BlockSpec((C, C2), lambda i: (0, 0)),
                pl.BlockSpec((1, C2), lambda i: (0, 0)),
                pl.BlockSpec((C2, C), lambda i: (0, 0)),
                pl.BlockSpec((1, C), lambda i: (0, 0)),
            ],
            out_specs=pl.BlockSpec((tm, C), lambda i: (i, 0)),
        ),
        compiler_params=pltpu.CompilerParams(
            dimension_semantics=("parallel",),
            vmem_limit_bytes=_VMEM_LIMIT),
    )(s.reshape(M, C), x.reshape(M, C),
      p['g'].reshape(1, C), p['bt'].reshape(1, C),
      p['w1'].astype(jnp.bfloat16), p['b1'].reshape(1, C2),
      p['w2'].astype(jnp.bfloat16), p['b2'].reshape(1, C))
    # TODO(synk): with C=enc_dim small, this kernel's (tm, C) output is not
    # lane-dense; a (rows, W*C) layout with in-kernel regrouping would fix it.
    return out.reshape(N, H, W, C)


# ---------------------------------------------------------------------------
# Module composition (glue in plain JAX, hot paths in the Pallas kernels above)
# ---------------------------------------------------------------------------
def basic_block(x, p):
    # out1 and the block output are only ever consumed as bf16 (patch matmul
    # operands), so write them as bf16 directly (bit-identical, half the HBM).
    out1 = conv2d_bn(x, p['w1'], p['s1'], p['sh1'], stride=2, padding=1,
                     relu=True, out_dtype=jnp.bfloat16)
    idn = conv2d_bn(x, p['wd'], p['sd'], p['shd'], stride=2, padding=0,
                    relu=False)                        # f32 residual for exact add
    return conv2d_bn(out1, p['w2'], p['s2'], p['sh2'], stride=1, padding=1,
                     relu=True, residual=idn, out_dtype=jnp.bfloat16)


def fusion_forward(rgb_end_nchw, gui_dep_nchw, params):
    rgb = jnp.transpose(rgb_end_nchw, (0, 2, 3, 1))
    dep = jnp.transpose(gui_dep_nchw, (0, 2, 3, 1))
    f = dep
    for bp in params['depth']:
        f = basic_block(f, bp)                        # bf16 NHWC feature
    cat = jnp.concatenate([rgb.astype(jnp.bfloat16), f], axis=-1)
    dec = conv2d_bn(cat, params['convde_w'], params['convde_s'],
                    params['convde_sh'], stride=1, padding=1, relu=True)
    dec = strip_conv_block(dec, params['strip'])
    return jnp.transpose(dec, (0, 3, 1, 2))           # back to NCHW


# ---------------------------------------------------------------------------
# Deterministic parameter initialization (shapes follow the PyTorch __init__)
# ---------------------------------------------------------------------------
class KeyGen:
    def __init__(self, seed):
        self._key = jax.random.PRNGKey(seed)

    def __call__(self):
        self._key, sub = jax.random.split(self._key)
        return sub


def conv_weight(kg, cout, cin, kh, kw):
    # PyTorch Conv2d weight (Cout, Cin, KH, KW) -> kernel layout (KH, KW, Cin, Cout)
    w = jax.random.normal(kg(), (cout, cin, kh, kw), jnp.float32)
    w = w * (1.0 / (cin * kh * kw) ** 0.5)
    return jnp.transpose(w, (2, 3, 1, 0))


def bn_fold(kg, c, eps=1e-5):
    gamma = 1.0 + 0.1 * jax.random.normal(kg(), (c,), jnp.float32)
    beta = 0.1 * jax.random.normal(kg(), (c,), jnp.float32)
    mean = 0.1 * jax.random.normal(kg(), (c,), jnp.float32)
    var = 1.0 + 0.1 * jnp.abs(jax.random.normal(kg(), (c,), jnp.float32))
    scale = gamma / jnp.sqrt(var + eps)
    shift = beta - mean * scale
    return scale, shift


def init_params(enc_dim, dim, hdim, seed=42):
    kg = KeyGen(seed)

    def basic_block_params(cin, cout=128):
        s1, sh1 = bn_fold(kg, cout)
        s2, sh2 = bn_fold(kg, cout)
        sd, shd = bn_fold(kg, cout)
        return dict(
            w1=conv_weight(kg, cout, cin, 3, 3), s1=s1, sh1=sh1,
            w2=conv_weight(kg, cout, cout, 3, 3), s2=s2, sh2=sh2,
            wd=conv_weight(kg, cout, cin, 1, 1), sd=sd, shd=shd,
        )

    depth = [basic_block_params(dim),
             basic_block_params(128),
             basic_block_params(128)]

    convde_w = conv_weight(kg, enc_dim, enc_dim + 128, 3, 3)
    convde_s, convde_sh = bn_fold(kg, enc_dim)

    C = enc_dim
    KH, KW = hdim, 2 * hdim
    # depthwise strip weights: torch (C,1,KH,1)/(C,1,1,KW) -> (KH, C)/(KW, C)
    wH = jnp.transpose(jax.random.normal(kg(), (C, KH), jnp.float32) * (1.0 / KH ** 0.5))
    wW = jnp.transpose(jax.random.normal(kg(), (C, KW), jnp.float32) * (1.0 / KW ** 0.5))
    bH = 0.05 * jax.random.normal(kg(), (C,), jnp.float32)
    bW = 0.05 * jax.random.normal(kg(), (C,), jnp.float32)

    g = 1.0 + 0.1 * jax.random.normal(kg(), (C,), jnp.float32)      # LayerNorm weight
    bt = 0.1 * jax.random.normal(kg(), (C,), jnp.float32)           # LayerNorm bias
    # pwconv1: torch Linear weight (2C, C) -> (C, 2C); pwconv2: (C, 2C) -> (2C, C)
    w1 = jnp.transpose(jax.random.normal(kg(), (2 * C, C), jnp.float32) * (1.0 / C ** 0.5))
    b1 = 0.05 * jax.random.normal(kg(), (2 * C,), jnp.float32)
    w2 = jnp.transpose(jax.random.normal(kg(), (C, 2 * C), jnp.float32) * (1.0 / (2 * C) ** 0.5))
    b2 = 0.05 * jax.random.normal(kg(), (C,), jnp.float32)

    strip = dict(wH=wH, bH=bH, wW=wW, bW=bW, g=g, bt=bt,
                 w1=w1, b1=b1, w2=w2, b2=b2)

    return dict(depth=depth, convde_w=convde_w, convde_s=convde_s,
                convde_sh=convde_sh, strip=strip)


if __name__ == "__main__":
    ENC_DIM, DIM, HDIM = 8, 4, 8          # hdim must be even (strip-slice offset)
    B, HG, WG = 2, 32, 32                 # gui_dep spatial; depth path downsamples 8x
    H, W = HG // 8, WG // 8               # rgb_end spatial must match depth output

    params = init_params(ENC_DIM, DIM, HDIM, seed=42)

    key = jax.random.PRNGKey(0)
    k1, k2 = jax.random.split(key)
    rgb_end = jax.random.normal(k1, (B, ENC_DIM, H, W), jnp.float32)   # NCHW like PyTorch
    gui_dep = jax.random.normal(k2, (B, DIM, HG, WG), jnp.float32)     # NCHW like PyTorch

    fwd = jax.jit(fusion_forward)
    out = jax.block_until_ready(fwd(rgb_end, gui_dep, params))

    assert out.shape == (B, ENC_DIM, H, W), out.shape
    assert bool(jnp.isfinite(out).all())
    print("KERNEL_OK")
</pallas_src>

<mosaic_0001>
module attributes {stable_mosaic.version = 11 : i64} {
  func.func @_conv_mm_kernel_single(%arg0: i32, %arg1: i32, %arg2: memref<512x36xbf16, #tpu.memory_space<vmem>>, %arg3: memref<36x128xbf16, #tpu.memory_space<vmem>>, %arg4: memref<1x128xf32, #tpu.memory_space<vmem>>, %arg5: memref<1x128xf32, #tpu.memory_space<vmem>>, %arg6: memref<512x128xbf16, #tpu.memory_space<vmem>>) attributes {dimension_semantics = [#tpu.dimension_semantics<parallel>, #tpu.dimension_semantics<parallel>], iteration_bounds = array<i64: 1, 1>, scalar_prefetch = 0 : i64, scratch_operands = 0 : i64, tpu.core_type = #tpu.core_type<tc>, window_params = [{transform_indices = @transform_0, window_bounds = array<i64: 512, 36>}, {transform_indices = @transform_1, window_bounds = array<i64: 36, 128>}, {transform_indices = @transform_2, window_bounds = array<i64: 1, 128>}, {transform_indices = @transform_3, window_bounds = array<i64: 1, 128>}, {transform_indices = @transform_4, window_bounds = array<i64: 512, 128>}]} {
    %c0 = arith.constant 0 : index
    %c0_0 = arith.constant 0 : index
    %0 = vector.load %arg2[%c0, %c0_0] : memref<512x36xbf16, #tpu.memory_space<vmem>>, vector<512x36xbf16>
    %c0_1 = arith.constant 0 : index
    %c0_2 = arith.constant 0 : index
    %1 = vector.load %arg3[%c0_1, %c0_2] : memref<36x128xbf16, #tpu.memory_space<vmem>>, vector<36x128xbf16>
    %cst = arith.constant dense<0.000000e+00> : vector<512x128xf32>
    %2 = tpu.matmul %0, %1, %cst {dimension_numbers = #tpu.dot_dimension_numbers<[1], [0], [0], [1], [0, 0, 1, 1], [], []>} : vector<512x36xbf16>, vector<36x128xbf16>, vector<512x128xf32> -> vector<512x128xf32>
    %c0_3 = arith.constant 0 : index
    %c0_4 = arith.constant 0 : index
    %3 = vector.load %arg4[%c0_3, %c0_4] : memref<1x128xf32, #tpu.memory_space<vmem>>, vector<1x128xf32>
    %4 = vector.broadcast %3 : vector<1x128xf32> to vector<512x128xf32>
    %5 = arith.mulf %2, %4 : vector<512x128xf32>
    %c0_5 = arith.constant 0 : index
    %c0_6 = arith.constant 0 : index
    %6 = vector.load %arg5[%c0_5, %c0_6] : memref<1x128xf32, #tpu.memory_space<vmem>>, vector<1x128xf32>
    %7 = vector.broadcast %6 : vector<1x128xf32> to vector<512x128xf32>
    %8 = arith.addf %5, %7 : vector<512x128xf32>
    %cst_7 = arith.constant 0.000000e+00 : f32
    %9 = vector.broadcast %cst_7 : f32 to vector<512x128xf32>
    %10 = arith.maximumf %8, %9 : vector<512x128xf32>
    %11 = arith.truncf %10 : vector<512x128xf32> to vector<512x128xbf16>
    %c0_8 = arith.constant 0 : index
    %c0_9 = arith.constant 0 : index
    %12 = vector.load %arg6[%c0_8, %c0_9] : memref<512x128xbf16, #tpu.memory_space<vmem>>, vector<512x128xbf16>
    tpu.vector_store %arg6[%c0_8, %c0_9], %11 {strides = array<i32>} : memref<512x128xbf16, #tpu.memory_space<vmem>>, vector<512x128xbf16>,
    return
  }
  func.func @transform_0(%arg0: i32, %arg1: i32) -> (i32, i32) {
    %c0_i32 = arith.constant 0 : i32
    %c0_i32_0 = arith.constant 0 : i32
    return %arg0, %c0_i32 : i32, i32
  }
  func.func @transform_1(%arg0: i32, %arg1: i32) -> (i32, i32) {
    %c0_i32 = arith.constant 0 : i32
    %c0_i32_0 = arith.constant 0 : i32
    return %c0_i32, %arg1 : i32, i32
  }
  func.func @transform_2(%arg0: i32, %arg1: i32) -> (i32, i32) {
    %c0_i32 = arith.constant 0 : i32
    %c0_i32_0 = arith.constant 0 : i32
    return %c0_i32, %arg1 : i32, i32
  }
  func.func @transform_3(%arg0: i32, %arg1: i32) -> (i32, i32) {
    %c0_i32 = arith.constant 0 : i32
    %c0_i32_0 = arith.constant 0 : i32
    return %c0_i32, %arg1 : i32, i32
  }
  func.func @transform_4(%arg0: i32, %arg1: i32) -> (i32, i32) {
    %c0_i32 = arith.constant 0 : i32
    return %arg0, %arg1 : i32, i32
  }
}

module attributes {stable_mosaic.version = 11 : i64} {
  func.func @_conv_mm_kernel(%arg0: i32, %arg1: i32, %arg2: i32, %arg3: memref<512x384xbf16, #tpu.memory_space<vmem>>, %arg4: memref<384x128xbf16, #tpu.memory_space<vmem>>, %arg5: memref<1x128xf32, #tpu.memory_space<vmem>>, %arg6: memref<1x128xf32, #tpu.memory_space<vmem>>, %arg7: memref<512x128xf32, #tpu.memory_space<vmem>>, %arg8: memref<512x128xbf16, #tpu.memory_space<vmem>>, %arg9: memref<512x128xf32, #tpu.memory_space<vmem>>) attributes {dimension_semantics = [#tpu.dimension_semantics<parallel>, #tpu.dimension_semantics<parallel>, #tpu.dimension_semantics<arbitrary>], iteration_bounds = array<i64: 1, 1, 3>, scalar_prefetch = 0 : i64, scratch_operands = 1 : i64, tpu.core_type = #tpu.core_type<tc>, window_params = [{transform_indices = @transform_0, window_bounds = array<i64: 512, 384>}, {transform_indices = @transform_1, window_bounds = array<i64: 384, 128>}, {transform_indices = @transform_2, window_bounds = array<i64: 1, 128>}, {transform_indices = @transform_3, window_bounds = array<i64: 1, 128>}, {transform_indices = @transform_4, window_bounds = array<i64: 512, 128>}, {transform_indices = @transform_5, window_bounds = array<i64: 512, 128>}]} {
    %c0_i32 = arith.constant 0 : i32
    %0 = arith.cmpi eq, %arg2, %c0_i32 : i32
    %1 = arith.extui %0 : i1 to i32
    %c0_i32_0 = arith.constant 0 : i32
    %2 = arith.cmpi ne, %1, %c0_i32_0 : i32
    scf.if %2 {
      %cst_9 = arith.constant 0.000000e+00 : f32
      %12 = vector.broadcast %cst_9 : f32 to vector<512x128xf32>
      %c0_10 = arith.constant 0 : index
      %c0_11 = arith.constant 0 : index
      %13 = vector.load %arg9[%c0_10, %c0_11] : memref<512x128xf32, #tpu.memory_space<vmem>>, vector<512x128xf32>
      tpu.vector_store %arg9[%c0_10, %c0_11], %12 {strides = array<i32>} : memref<512x128xf32, #tpu.memory_space<vmem>>, vector<512x128xf32>,
    } else {
    }
    %c0 = arith.constant 0 : index
    %c0_1 = arith.constant 0 : index
    %3 = vector.load %arg9[%c0, %c0_1] : memref<512x128xf32, #tpu.memory_space<vmem>>, vector<512x128xf32>
    %c0_2 = arith.constant 0 : index
    %c0_3 = arith.constant 0 : index
    %4 = vector.load %arg3[%c0_2, %c0_3] : memref<512x384xbf16, #tpu.memory_space<vmem>>, vector<512x384xbf16>
    %c0_4 = arith.constant 0 : index
    %c0_5 = arith.constant 0 : index
    %5 = vector.load %arg4[%c0_4, %c0_5] : memref<384x128xbf16, #tpu.memory_space<vmem>>, vector<384x128xbf16>
    %cst = arith.constant dense<0.000000e+00> : vector<512x128xf32>
    %6 = tpu.matmul %4, %5, %cst {dimension_numbers = #tpu.dot_dimension_numbers<[1], [0], [0], [1], [0, 0, 1, 1], [], []>} : vector<512x384xbf16>, vector<384x128xbf16>, vector<512x128xf32> -> vector<512x128xf32>
    %7 = arith.addf %3, %6 : vector<512x128xf32>
    %c0_6 = arith.constant 0 : index
    %c0_7 = arith.constant 0 : index
    %8 = vector.load %arg9[%c0_6, %c0_7] : memref<512x128xf32, #tpu.memory_space<vmem>>, vector<512x128xf32>
    tpu.vector_store %arg9[%c0_6, %c0_7], %7 {strides = array<i32>} : memref<512x128xf32, #tpu.memory_space<vmem>>, vector<512x128xf32>,
    %c2_i32 = arith.constant 2 : i32
    %9 = arith.cmpi eq, %arg2, %c2_i32 : i32
    %10 = arith.extui %9 : i1 to i32
    %c0_i32_8 = arith.constant 0 : i32
    %11 = arith.cmpi ne, %10, %c0_i32_8 : i32
    scf.if %11 {
      %c0_9 = arith.constant 0 : index
      %c0_10 = arith.constant 0 : index
      %12 = vector.load %arg9[%c0_9, %c0_10] : memref<512x128xf32, #tpu.memory_space<vmem>>, vector<512x128xf32>
      %c0_11 = arith.constant 0 : index
      %c0_12 = arith.constant 0 : index
      %13 = vector.load %arg5[%c0_11, %c0_12] : memref<1x128xf32, #tpu.memory_space<vmem>>, vector<1x128xf32>
      %14 = vector.broadcast %13 : vector<1x128xf32> to vector<512x128xf32>
      %15 = arith.mulf %12, %14 : vector<512x128xf32>
      %c0_13 = arith.constant 0 : index
      %c0_14 = arith.constant 0 : index
      %16 = vector.load %arg6[%c0_13, %c0_14] : memref<1x128xf32, #tpu.memory_space<vmem>>, vector<1x128xf32>
      %17 = vector.broadcast %16 : vector<1x128xf32> to vector<512x128xf32>
      %18 = arith.addf %15, %17 : vector<512x128xf32>
      %c0_15 = arith.constant 0 : index
      %c0_16 = arith.constant 0 : index
      %19 = vector.load %arg7[%c0_15, %c0_16] : memref<512x128xf32, #tpu.memory_space<vmem>>, vector<512x128xf32>
      %20 = arith.addf %18, %19 : vector<512x128xf32>
      %cst_17 = arith.constant 0.000000e+00 : f32
      %21 = vector.broadcast %cst_17 : f32 to vector<512x128xf32>
      %22 = arith.maximumf %20, %21 : vector<512x128xf32>
      %23 = arith.truncf %22 : vector<512x128xf32> to vector<512x128xbf16>
      %c0_18 = arith.constant 0 : index
      %c0_19 = arith.constant 0 : index
      %24 = vector.load %arg8[%c0_18, %c0_19] : memref<512x128xbf16, #tpu.memory_space<vmem>>, vector<512x128xbf16>
      tpu.vector_store %arg8[%c0_18, %c0_19], %23 {strides = array<i32>} : memref<512x128xbf16, #tpu.memory_space<vmem>>, vector<512x128xbf16>,
    } else {
    }
    return
  }
  func.func @transform_0(%arg0: i32, %arg1: i32, %arg2: i32) -> (i32, i32) {
    %c0_i32 = arith.constant 0 : i32
    return %arg0, %arg2 : i32, i32
  }
  func.func @transform_1(%arg0: i32, %arg1: i32, %arg2: i32) -> (i32, i32) {
    %c0_i32 = arith.constant 0 : i32
    return %arg2, %arg1 : i32, i32
  }
  func.func @transform_2(%arg0: i32, %arg1: i32, %arg2: i32) -> (i32, i32) {
    %c0_i32 = arith.constant 0 : i32
    %c0_i32_0 = arith.constant 0 : i32
    return %c0_i32, %arg1 : i32, i32
  }
  func.func @transform_3(%arg0: i32, %arg1: i32, %arg2: i32) -> (i32, i32) {
    %c0_i32 = arith.constant 0 : i32
    %c0_i32_0 = arith.constant 0 : i32
    return %c0_i32, %arg1 : i32, i32
  }
  func.func @transform_4(%arg0: i32, %arg1: i32, %arg2: i32) -> (i32, i32) {
    %c0_i32 = arith.constant 0 : i32
    return %arg0, %arg1 : i32, i32
  }
  func.func @transform_5(%arg0: i32, %arg1: i32, %arg2: i32) -> (i32, i32) {
    %c0_i32 = arith.constant 0 : i32
    return %arg0, %arg1 : i32, i32
  }
}

module attributes {stable_mosaic.version = 11 : i64} {
  func.func @_conv_mm_kernel_single(%arg0: i32, %arg1: i32, %arg2: memref<512x4xbf16, #tpu.memory_space<vmem>>, %arg3: memref<4x128xbf16, #tpu.memory_space<vmem>>, %arg4: memref<1x128xf32, #tpu.memory_space<vmem>>, %arg5: memref<1x128xf32, #tpu.memory_space<vmem>>, %arg6: memref<512x128xf32, #tpu.memory_space<vmem>>) attributes {dimension_semantics = [#tpu.dimension_semantics<parallel>, #tpu.dimension_semantics<parallel>], iteration_bounds = array<i64: 1, 1>, scalar_prefetch = 0 : i64, scratch_operands = 0 : i64, tpu.core_type = #tpu.core_type<tc>, window_params = [{transform_indices = @transform_0, window_bounds = array<i64: 512, 4>}, {transform_indices = @transform_1, window_bounds = array<i64: 4, 128>}, {transform_indices = @transform_2, window_bounds = array<i64: 1, 128>}, {transform_indices = @transform_3, window_bounds = array<i64: 1, 128>}, {transform_indices = @transform_4, window_bounds = array<i64: 512, 128>}]} {
    %c0 = arith.constant 0 : index
    %c0_0 = arith.constant 0 : index
    %0 = vector.load %arg2[%c0, %c0_0] : memref<512x4xbf16, #tpu.memory_space<vmem>>, vector<512x4xbf16>
    %c0_1 = arith.constant 0 : index
    %c0_2 = arith.constant 0 : index
    %1 = vector.load %arg3[%c0_1, %c0_2] : memref<4x128xbf16, #tpu.memory_space<vmem>>, vector<4x128xbf16>
    %cst = arith.constant dense<0.000000e+00> : vector<512x128xf32>
    %2 = tpu.matmul %0, %1, %cst {dimension_numbers = #tpu.dot_dimension_numbers<[1], [0], [0], [1], [0, 0, 1, 1], [], []>} : vector<512x4xbf16>, vector<4x128xbf16>, vector<512x128xf32> -> vector<512x128xf32>
    %c0_3 = arith.constant 0 : index
    %c0_4 = arith.constant 0 : index
    %3 = vector.load %arg4[%c0_3, %c0_4] : memref<1x128xf32, #tpu.memory_space<vmem>>, vector<1x128xf32>
    %4 = vector.broadcast %3 : vector<1x128xf32> to vector<512x128xf32>
    %5 = arith.mulf %2, %4 : vector<512x128xf32>
    %c0_5 = arith.constant 0 : index
    %c0_6 = arith.constant 0 : index
    %6 = vector.load %arg5[%c0_5, %c0_6] : memref<1x128xf32, #tpu.memory_space<vmem>>, vector<1x128xf32>
    %7 = vector.broadcast %6 : vector<1x128xf32> to vector<512x128xf32>
    %8 = arith.addf %5, %7 : vector<512x128xf32>
    %c0_7 = arith.constant 0 : index
    %c0_8 = arith.constant 0 : index
    %9 = vector.load %arg6[%c0_7, %c0_8] : memref<512x128xf32, #tpu.memory_space<vmem>>, vector<512x128xf32>
    tpu.vector_store %arg6[%c0_7, %c0_8], %8 {strides = array<i32>} : memref<512x128xf32, #tpu.memory_space<vmem>>, vector<512x128xf32>,
    return
  }
  func.func @transform_0(%arg0: i32, %arg1: i32) -> (i32, i32) {
    %c0_i32 = arith.constant 0 : i32
    %c0_i32_0 = arith.constant 0 : i32
    return %arg0, %c0_i32 : i32, i32
  }
  func.func @transform_1(%arg0: i32, %arg1: i32) -> (i32, i32) {
    %c0_i32 = arith.constant 0 : i32
    %c0_i32_0 = arith.constant 0 : i32
    return %c0_i32, %arg1 : i32, i32
  }
  func.func @transform_2(%arg0: i32, %arg1: i32) -> (i32, i32) {
    %c0_i32 = arith.constant 0 : i32
    %c0_i32_0 = arith.constant 0 : i32
    return %c0_i32, %arg1 : i32, i32
  }
  func.func @transform_3(%arg0: i32, %arg1: i32) -> (i32, i32) {
    %c0_i32 = arith.constant 0 : i32
    %c0_i32_0 = arith.constant 0 : i32
    return %c0_i32, %arg1 : i32, i32
  }
  func.func @transform_4(%arg0: i32, %arg1: i32) -> (i32, i32) {
    %c0_i32 = arith.constant 0 : i32
    return %arg0, %arg1 : i32, i32
  }
}

module attributes {stable_mosaic.version = 11 : i64} {
  func.func @_conv_mm_kernel(%arg0: i32, %arg1: i32, %arg2: i32, %arg3: memref<128x384xbf16, #tpu.memory_space<vmem>>, %arg4: memref<384x128xbf16, #tpu.memory_space<vmem>>, %arg5: memref<1x128xf32, #tpu.memory_space<vmem>>, %arg6: memref<1x128xf32, #tpu.memory_space<vmem>>, %arg7: memref<128x128xbf16, #tpu.memory_space<vmem>>, %arg8: memref<128x128xf32, #tpu.memory_space<vmem>>) attributes {dimension_semantics = [#tpu.dimension_semantics<parallel>, #tpu.dimension_semantics<parallel>, #tpu.dimension_semantics<arbitrary>], iteration_bounds = array<i64: 1, 1, 3>, scalar_prefetch = 0 : i64, scratch_operands = 1 : i64, tpu.core_type = #tpu.core_type<tc>, window_params = [{transform_indices = @transform_0, window_bounds = array<i64: 128, 384>}, {transform_indices = @transform_1, window_bounds = array<i64: 384, 128>}, {transform_indices = @transform_2, window_bounds = array<i64: 1, 128>}, {transform_indices = @transform_3, window_bounds = array<i64: 1, 128>}, {transform_indices = @transform_4, window_bounds = array<i64: 128, 128>}]} {
    %c0_i32 = arith.constant 0 : i32
    %0 = arith.cmpi eq, %arg2, %c0_i32 : i32
    %1 = arith.extui %0 : i1 to i32
    %c0_i32_0 = arith.constant 0 : i32
    %2 = arith.cmpi ne, %1, %c0_i32_0 : i32
    scf.if %2 {
      %cst_9 = arith.constant 0.000000e+00 : f32
      %12 = vector.broadcast %cst_9 : f32 to vector<128x128xf32>
      %c0_10 = arith.constant 0 : index
      %c0_11 = arith.constant 0 : index
      %13 = vector.load %arg8[%c0_10, %c0_11] : memref<128x128xf32, #tpu.memory_space<vmem>>, vector<128x128xf32>
      tpu.vector_store %arg8[%c0_10, %c0_11], %12 {strides = array<i32>} : memref<128x128xf32, #tpu.memory_space<vmem>>, vector<128x128xf32>,
    } else {
    }
    %c0 = arith.constant 0 : index
    %c0_1 = arith.constant 0 : index
    %3 = vector.load %arg8[%c0, %c0_1] : memref<128x128xf32, #tpu.memory_space<vmem>>, vector<128x128xf32>
    %c0_2 = arith.constant 0 : index
    %c0_3 = arith.constant 0 : index
    %4 = vector.load %arg3[%c0_2, %c0_3] : memref<128x384xbf16, #tpu.memory_space<vmem>>, vector<128x384xbf16>
    %c0_4 = arith.constant 0 : index
    %c0_5 = arith.constant 0 : index
    %5 = vector.load %arg4[%c0_4, %c0_5] : memref<384x128xbf16, #tpu.memory_space<vmem>>, vector<384x128xbf16>
    %cst = arith.constant dense<0.000000e+00> : vector<128x128xf32>
    %6 = tpu.matmul %4, %5, %cst {dimension_numbers = #tpu.dot_dimension_numbers<[1], [0], [0], [1], [0, 0, 1, 1], [], []>} : vector<128x384xbf16>, vector<384x128xbf16>, vector<128x128xf32> -> vector<128x128xf32>
    %7 = arith.addf %3, %6 : vector<128x128xf32>
    %c0_6 = arith.constant 0 : index
    %c0_7 = arith.constant 0 : index
    %8 = vector.load %arg8[%c0_6, %c0_7] : memref<128x128xf32, #tpu.memory_space<vmem>>, vector<128x128xf32>
    tpu.vector_store %arg8[%c0_6, %c0_7], %7 {strides = array<i32>} : memref<128x128xf32, #tpu.memory_space<vmem>>, vector<128x128xf32>,
    %c2_i32 = arith.constant 2 : i32
    %9 = arith.cmpi eq, %arg2, %c2_i32 : i32
    %10 = arith.extui %9 : i1 to i32
    %c0_i32_8 = arith.constant 0 : i32
    %11 = arith.cmpi ne, %10, %c0_i32_8 : i32
    scf.if %11 {
      %c0_9 = arith.constant 0 : index
      %c0_10 = arith.constant 0 : index
      %12 = vector.load %arg8[%c0_9, %c0_10] : memref<128x128xf32, #tpu.memory_space<vmem>>, vector<128x128xf32>
      %c0_11 = arith.constant 0 : index
      %c0_12 = arith.constant 0 : index
      %13 = vector.load %arg5[%c0_11, %c0_12] : memref<1x128xf32, #tpu.memory_space<vmem>>, vector<1x128xf32>
      %14 = vector.broadcast %13 : vector<1x128xf32> to vector<128x128xf32>
      %15 = arith.mulf %12, %14 : vector<128x128xf32>
      %c0_13 = arith.constant 0 : index
      %c0_14 = arith.constant 0 : index
      %16 = vector.load %arg6[%c0_13, %c0_14] : memref<1x128xf32, #tpu.memory_space<vmem>>, vector<1x128xf32>
      %17 = vector.broadcast %16 : vector<1x128xf32> to vector<128x128xf32>
      %18 = arith.addf %15, %17 : vector<128x128xf32>
      %cst_15 = arith.constant 0.000000e+00 : f32
      %19 = vector.broadcast %cst_15 : f32 to vector<128x128xf32>
      %20 = arith.maximumf %18, %19 : vector<128x128xf32>
      %21 = arith.truncf %20 : vector<128x128xf32> to vector<128x128xbf16>
      %c0_16 = arith.constant 0 : index
      %c0_17 = arith.constant 0 : index
      %22 = vector.load %arg7[%c0_16, %c0_17] : memref<128x128xbf16, #tpu.memory_space<vmem>>, vector<128x128xbf16>
      tpu.vector_store %arg7[%c0_16, %c0_17], %21 {strides = array<i32>} : memref<128x128xbf16, #tpu.memory_space<vmem>>, vector<128x128xbf16>,
    } else {
    }
    return
  }
  func.func @transform_0(%arg0: i32, %arg1: i32, %arg2: i32) -> (i32, i32) {
    %c0_i32 = arith.constant 0 : i32
    return %arg0, %arg2 : i32, i32
  }
  func.func @transform_1(%arg0: i32, %arg1: i32, %arg2: i32) -> (i32, i32) {
    %c0_i32 = arith.constant 0 : i32
    return %arg2, %arg1 : i32, i32
  }
  func.func @transform_2(%arg0: i32, %arg1: i32, %arg2: i32) -> (i32, i32) {
    %c0_i32 = arith.constant 0 : i32
    %c0_i32_0 = arith.constant 0 : i32
    return %c0_i32, %arg1 : i32, i32
  }
  func.func @transform_3(%arg0: i32, %arg1: i32, %arg2: i32) -> (i32, i32) {
    %c0_i32 = arith.constant 0 : i32
    %c0_i32_0 = arith.constant 0 : i32
    return %c0_i32, %arg1 : i32, i32
  }
  func.func @transform_4(%arg0: i32, %arg1: i32, %arg2: i32) -> (i32, i32) {
    %c0_i32 = arith.constant 0 : i32
    return %arg0, %arg1 : i32, i32
  }
}

module attributes {stable_mosaic.version = 11 : i64} {
  func.func @_conv_mm_kernel_single(%arg0: i32, %arg1: i32, %arg2: memref<128x128xbf16, #tpu.memory_space<vmem>>, %arg3: memref<128x128xbf16, #tpu.memory_space<vmem>>, %arg4: memref<1x128xf32, #tpu.memory_space<vmem>>, %arg5: memref<1x128xf32, #tpu.memory_space<vmem>>, %arg6: memref<128x128xf32, #tpu.memory_space<vmem>>) attributes {dimension_semantics = [#tpu.dimension_semantics<parallel>, #tpu.dimension_semantics<parallel>], iteration_bounds = array<i64: 1, 1>, scalar_prefetch = 0 : i64, scratch_operands = 0 : i64, tpu.core_type = #tpu.core_type<tc>, window_params = [{transform_indices = @transform_0, window_bounds = array<i64: 128, 128>}, {transform_indices = @transform_1, window_bounds = array<i64: 128, 128>}, {transform_indices = @transform_2, window_bounds = array<i64: 1, 128>}, {transform_indices = @transform_3, window_bounds = array<i64: 1, 128>}, {transform_indices = @transform_4, window_bounds = array<i64: 128, 128>}]} {
    %c0 = arith.constant 0 : index
    %c0_0 = arith.constant 0 : index
    %0 = vector.load %arg2[%c0, %c0_0] : memref<128x128xbf16, #tpu.memory_space<vmem>>, vector<128x128xbf16>
    %c0_1 = arith.constant 0 : index
    %c0_2 = arith.constant 0 : index
    %1 = vector.load %arg3[%c0_1, %c0_2] : memref<128x128xbf16, #tpu.memory_space<vmem>>, vector<128x128xbf16>
    %cst = arith.constant dense<0.000000e+00> : vector<128x128xf32>
    %2 = tpu.matmul %0, %1, %cst {dimension_numbers = #tpu.dot_dimension_numbers<[1], [0], [0], [1], [0, 0, 1, 1], [], []>} : vector<128x128xbf16>, vector<128x128xbf16>, vector<128x128xf32> -> vector<128x128xf32>
    %c0_3 = arith.constant 0 : index
    %c0_4 = arith.constant 0 : index
    %3 = vector.load %arg4[%c0_3, %c0_4] : memref<1x128xf32, #tpu.memory_space<vmem>>, vector<1x128xf32>
    %4 = vector.broadcast %3 : vector<1x128xf32> to vector<128x128xf32>
    %5 = arith.mulf %2, %4 : vector<128x128xf32>
    %c0_5 = arith.constant 0 : index
    %c0_6 = arith.constant 0 : index
    %6 = vector.load %arg5[%c0_5, %c0_6] : memref<1x128xf32, #tpu.memory_space<vmem>>, vector<1x128xf32>
    %7 = vector.broadcast %6 : vector<1x128xf32> to vector<128x128xf32>
    %8 = arith.addf %5, %7 : vector<128x128xf32>
    %c0_7 = arith.constant 0 : index
    %c0_8 = arith.constant 0 : index
    %9 = vector.load %arg6[%c0_7, %c0_8] : memref<128x128xf32, #tpu.memory_space<vmem>>, vector<128x128xf32>
    tpu.vector_store %arg6[%c0_7, %c0_8], %8 {strides = array<i32>} : memref<128x128xf32, #tpu.memory_space<vmem>>, vector<128x128xf32>,
    return
  }
  func.func @transform_0(%arg0: i32, %arg1: i32) -> (i32, i32) {
    %c0_i32 = arith.constant 0 : i32
    %c0_i32_0 = arith.constant 0 : i32
    return %arg0, %c0_i32 : i32, i32
  }
  func.func @transform_1(%arg0: i32, %arg1: i32) -> (i32, i32) {
    %c0_i32 = arith.constant 0 : i32
    %c0_i32_0 = arith.constant 0 : i32
    return %c0_i32, %arg1 : i32, i32
  }
  func.func @transform_2(%arg0: i32, %arg1: i32) -> (i32, i32) {
    %c0_i32 = arith.constant 0 : i32
    %c0_i32_0 = arith.constant 0 : i32
    return %c0_i32, %arg1 : i32, i32
  }
  func.func @transform_3(%arg0: i32, %arg1: i32) -> (i32, i32) {
    %c0_i32 = arith.constant 0 : i32
    %c0_i32_0 = arith.constant 0 : i32
    return %c0_i32, %arg1 : i32, i32
  }
  func.func @transform_4(%arg0: i32, %arg1: i32) -> (i32, i32) {
    %c0_i32 = arith.constant 0 : i32
    return %arg0, %arg1 : i32, i32
  }
}

module attributes {stable_mosaic.version = 11 : i64} {
  func.func @_conv_mm_kernel(%arg0: i32, %arg1: i32, %arg2: i32, %arg3: memref<128x384xbf16, #tpu.memory_space<vmem>>, %arg4: memref<384x128xbf16, #tpu.memory_space<vmem>>, %arg5: memref<1x128xf32, #tpu.memory_space<vmem>>, %arg6: memref<1x128xf32, #tpu.memory_space<vmem>>, %arg7: memref<128x128xf32, #tpu.memory_space<vmem>>, %arg8: memref<128x128xbf16, #tpu.memory_space<vmem>>, %arg9: memref<128x128xf32, #tpu.memory_space<vmem>>) attributes {dimension_semantics = [#tpu.dimension_semantics<parallel>, #tpu.dimension_semantics<parallel>, #tpu.dimension_semantics<arbitrary>], iteration_bounds = array<i64: 1, 1, 3>, scalar_prefetch = 0 : i64, scratch_operands = 1 : i64, tpu.core_type = #tpu.core_type<tc>, window_params = [{transform_indices = @transform_0, window_bounds = array<i64: 128, 384>}, {transform_indices = @transform_1, window_bounds = array<i64: 384, 128>}, {transform_indices = @transform_2, window_bounds = array<i64: 1, 128>}, {transform_indices = @transform_3, window_bounds = array<i64: 1, 128>}, {transform_indices = @transform_4, window_bounds = array<i64: 128, 128>}, {transform_indices = @transform_5, window_bounds = array<i64: 128, 128>}]} {
    %c0_i32 = arith.constant 0 : i32
    %0 = arith.cmpi eq, %arg2, %c0_i32 : i32
    %1 = arith.extui %0 : i1 to i32
    %c0_i32_0 = arith.constant 0 : i32
    %2 = arith.cmpi ne, %1, %c0_i32_0 : i32
    scf.if %2 {
      %cst_9 = arith.constant 0.000000e+00 : f32
      %12 = vector.broadcast %cst_9 : f32 to vector<128x128xf32>
      %c0_10 = arith.constant 0 : index
      %c0_11 = arith.constant 0 : index
      %13 = vector.load %arg9[%c0_10, %c0_11] : memref<128x128xf32, #tpu.memory_space<vmem>>, vector<128x128xf32>
      tpu.vector_store %arg9[%c0_10, %c0_11], %12 {strides = array<i32>} : memref<128x128xf32, #tpu.memory_space<vmem>>, vector<128x128xf32>,
    } else {
    }
    %c0 = arith.constant 0 : index
    %c0_1 = arith.constant 0 : index
    %3 = vector.load %arg9[%c0, %c0_1] : memref<128x128xf32, #tpu.memory_space<vmem>>, vector<128x128xf32>
    %c0_2 = arith.constant 0 : index
    %c0_3 = arith.constant 0 : index
    %4 = vector.load %arg3[%c0_2, %c0_3] : memref<128x384xbf16, #tpu.memory_space<vmem>>, vector<128x384xbf16>
    %c0_4 = arith.constant 0 : index
    %c0_5 = arith.constant 0 : index
    %5 = vector.load %arg4[%c0_4, %c0_5] : memref<384x128xbf16, #tpu.memory_space<vmem>>, vector<384x128xbf16>
    %cst = arith.constant dense<0.000000e+00> : vector<128x128xf32>
    %6 = tpu.matmul %4, %5, %cst {dimension_numbers = #tpu.dot_dimension_numbers<[1], [0], [0], [1], [0, 0, 1, 1], [], []>} : vector<128x384xbf16>, vector<384x128xbf16>, vector<128x128xf32> -> vector<128x128xf32>
    %7 = arith.addf %3, %6 : vector<128x128xf32>
    %c0_6 = arith.constant 0 : index
    %c0_7 = arith.constant 0 : index
    %8 = vector.load %arg9[%c0_6, %c0_7] : memref<128x128xf32, #tpu.memory_space<vmem>>, vector<128x128xf32>
    tpu.vector_store %arg9[%c0_6, %c0_7], %7 {strides = array<i32>} : memref<128x128xf32, #tpu.memory_space<vmem>>, vector<128x128xf32>,
    %c2_i32 = arith.constant 2 : i32
    %9 = arith.cmpi eq, %arg2, %c2_i32 : i32
    %10 = arith.extui %9 : i1 to i32
    %c0_i32_8 = arith.constant 0 : i32
    %11 = arith.cmpi ne, %10, %c0_i32_8 : i32
    scf.if %11 {
      %c0_9 = arith.constant 0 : index
      %c0_10 = arith.constant 0 : index
      %12 = vector.load %arg9[%c0_9, %c0_10] : memref<128x128xf32, #tpu.memory_space<vmem>>, vector<128x128xf32>
      %c0_11 = arith.constant 0 : index
      %c0_12 = arith.constant 0 : index
      %13 = vector.load %arg5[%c0_11, %c0_12] : memref<1x128xf32, #tpu.memory_space<vmem>>, vector<1x128xf32>
      %14 = vector.broadcast %13 : vector<1x128xf32> to vector<128x128xf32>
      %15 = arith.mulf %12, %14 : vector<128x128xf32>
      %c0_13 = arith.constant 0 : index
      %c0_14 = arith.constant 0 : index
      %16 = vector.load %arg6[%c0_13, %c0_14] : memref<1x128xf32, #tpu.memory_space<vmem>>, vector<1x128xf32>
      %17 = vector.broadcast %16 : vector<1x128xf32> to vector<128x128xf32>
      %18 = arith.addf %15, %17 : vector<128x128xf32>
      %c0_15 = arith.constant 0 : index
      %c0_16 = arith.constant 0 : index
      %19 = vector.load %arg7[%c0_15, %c0_16] : memref<128x128xf32, #tpu.memory_space<vmem>>, vector<128x128xf32>
      %20 = arith.addf %18, %19 : vector<128x128xf32>
      %cst_17 = arith.constant 0.000000e+00 : f32
      %21 = vector.broadcast %cst_17 : f32 to vector<128x128xf32>
      %22 = arith.maximumf %20, %21 : vector<128x128xf32>
      %23 = arith.truncf %22 : vector<128x128xf32> to vector<128x128xbf16>
      %c0_18 = arith.constant 0 : index
      %c0_19 = arith.constant 0 : index
      %24 = vector.load %arg8[%c0_18, %c0_19] : memref<128x128xbf16, #tpu.memory_space<vmem>>, vector<128x128xbf16>
      tpu.vector_store %arg8[%c0_18, %c0_19], %23 {strides = array<i32>} : memref<128x128xbf16, #tpu.memory_space<vmem>>, vector<128x128xbf16>,
    } else {
    }
    return
  }
  func.func @transform_0(%arg0: i32, %arg1: i32, %arg2: i32) -> (i32, i32) {
    %c0_i32 = arith.constant 0 : i32
    return %arg0, %arg2 : i32, i32
  }
  func.func @transform_1(%arg0: i32, %arg1: i32, %arg2: i32) -> (i32, i32) {
    %c0_i32 = arith.constant 0 : i32
    return %arg2, %arg1 : i32, i32
  }
  func.func @transform_2(%arg0: i32, %arg1: i32, %arg2: i32) -> (i32, i32) {
    %c0_i32 = arith.constant 0 : i32
    %c0_i32_0 = arith.constant 0 : i32
    return %c0_i32, %arg1 : i32, i32
  }
  func.func @transform_3(%arg0: i32, %arg1: i32, %arg2: i32) -> (i32, i32) {
    %c0_i32 = arith.constant 0 : i32
    %c0_i32_0 = arith.constant 0 : i32
    return %c0_i32, %arg1 : i32, i32
  }
  func.func @transform_4(%arg0: i32, %arg1: i32, %arg2: i32) -> (i32, i32) {
    %c0_i32 = arith.constant 0 : i32
    return %arg0, %arg1 : i32, i32
  }
  func.func @transform_5(%arg0: i32, %arg1: i32, %arg2: i32) -> (i32, i32) {
    %c0_i32 = arith.constant 0 : i32
    return %arg0, %arg1 : i32, i32
  }
}

module attributes {stable_mosaic.version = 11 : i64} {
  func.func @_conv_mm_kernel(%arg0: i32, %arg1: i32, %arg2: i32, %arg3: memref<32x384xbf16, #tpu.memory_space<vmem>>, %arg4: memref<384x128xbf16, #tpu.memory_space<vmem>>, %arg5: memref<1x128xf32, #tpu.memory_space<vmem>>, %arg6: memref<1x128xf32, #tpu.memory_space<vmem>>, %arg7: memref<32x128xbf16, #tpu.memory_space<vmem>>, %arg8: memref<32x128xf32, #tpu.memory_space<vmem>>) attributes {dimension_semantics = [#tpu.dimension_semantics<parallel>, #tpu.dimension_semantics<parallel>, #tpu.dimension_semantics<arbitrary>], iteration_bounds = array<i64: 1, 1, 3>, scalar_prefetch = 0 : i64, scratch_operands = 1 : i64, tpu.core_type = #tpu.core_type<tc>, window_params = [{transform_indices = @transform_0, window_bounds = array<i64: 32, 384>}, {transform_indices = @transform_1, window_bounds = array<i64: 384, 128>}, {transform_indices = @transform_2, window_bounds = array<i64: 1, 128>}, {transform_indices = @transform_3, window_bounds = array<i64: 1, 128>}, {transform_indices = @transform_4, window_bounds = array<i64: 32, 128>}]} {
    %c0_i32 = arith.constant 0 : i32
    %0 = arith.cmpi eq, %arg2, %c0_i32 : i32
    %1 = arith.extui %0 : i1 to i32
    %c0_i32_0 = arith.constant 0 : i32
    %2 = arith.cmpi ne, %1, %c0_i32_0 : i32
    scf.if %2 {
      %cst_9 = arith.constant 0.000000e+00 : f32
      %12 = vector.broadcast %cst_9 : f32 to vector<32x128xf32>
      %c0_10 = arith.constant 0 : index
      %c0_11 = arith.constant 0 : index
      %13 = vector.load %arg8[%c0_10, %c0_11] : memref<32x128xf32, #tpu.memory_space<vmem>>, vector<32x128xf32>
      tpu.vector_store %arg8[%c0_10, %c0_11], %12 {strides = array<i32>} : memref<32x128xf32, #tpu.memory_space<vmem>>, vector<32x128xf32>,
    } else {
    }
    %c0 = arith.constant 0 : index
    %c0_1 = arith.constant 0 : index
    %3 = vector.load %arg8[%c0, %c0_1] : memref<32x128xf32, #tpu.memory_space<vmem>>, vector<32x128xf32>
    %c0_2 = arith.constant 0 : index
    %c0_3 = arith.constant 0 : index
    %4 = vector.load %arg3[%c0_2, %c0_3] : memref<32x384xbf16, #tpu.memory_space<vmem>>, vector<32x384xbf16>
    %c0_4 = arith.constant 0 : index
    %c0_5 = arith.constant 0 : index
    %5 = vector.load %arg4[%c0_4, %c0_5] : memref<384x128xbf16, #tpu.memory_space<vmem>>, vector<384x128xbf16>
    %cst = arith.constant dense<0.000000e+00> : vector<32x128xf32>
    %6 = tpu.matmul %4, %5, %cst {dimension_numbers = #tpu.dot_dimension_numbers<[1], [0], [0], [1], [0, 0, 1, 1], [], []>} : vector<32x384xbf16>, vector<384x128xbf16>, vector<32x128xf32> -> vector<32x128xf32>
    %7 = arith.addf %3, %6 : vector<32x128xf32>
    %c0_6 = arith.constant 0 : index
    %c0_7 = arith.constant 0 : index
    %8 = vector.load %arg8[%c0_6, %c0_7] : memref<32x128xf32, #tpu.memory_space<vmem>>, vector<32x128xf32>
    tpu.vector_store %arg8[%c0_6, %c0_7], %7 {strides = array<i32>} : memref<32x128xf32, #tpu.memory_space<vmem>>, vector<32x128xf32>,
    %c2_i32 = arith.constant 2 : i32
    %9 = arith.cmpi eq, %arg2, %c2_i32 : i32
    %10 = arith.extui %9 : i1 to i32
    %c0_i32_8 = arith.constant 0 : i32
    %11 = arith.cmpi ne, %10, %c0_i32_8 : i32
    scf.if %11 {
      %c0_9 = arith.constant 0 : index
      %c0_10 = arith.constant 0 : index
      %12 = vector.load %arg8[%c0_9, %c0_10] : memref<32x128xf32, #tpu.memory_space<vmem>>, vector<32x128xf32>
      %c0_11 = arith.constant 0 : index
      %c0_12 = arith.constant 0 : index
      %13 = vector.load %arg5[%c0_11, %c0_12] : memref<1x128xf32, #tpu.memory_space<vmem>>, vector<1x128xf32>
      %14 = vector.broadcast %13 : vector<1x128xf32> to vector<32x128xf32>
      %15 = arith.mulf %12, %14 : vector<32x128xf32>
      %c0_13 = arith.constant 0 : index
      %c0_14 = arith.constant 0 : index
      %16 = vector.load %arg6[%c0_13, %c0_14] : memref<1x128xf32, #tpu.memory_space<vmem>>, vector<1x128xf32>
      %17 = vector.broadcast %16 : vector<1x128xf32> to vector<32x128xf32>
      %18 = arith.addf %15, %17 : vector<32x128xf32>
      %cst_15 = arith.constant 0.000000e+00 : f32
      %19 = vector.broadcast %cst_15 : f32 to vector<32x128xf32>
      %20 = arith.maximumf %18, %19 : vector<32x128xf32>
      %21 = arith.truncf %20 : vector<32x128xf32> to vector<32x128xbf16>
      %c0_16 = arith.constant 0 : index
      %c0_17 = arith.constant 0 : index
      %22 = vector.load %arg7[%c0_16, %c0_17] : memref<32x128xbf16, #tpu.memory_space<vmem>>, vector<32x128xbf16>
      tpu.vector_store %arg7[%c0_16, %c0_17], %21 {strides = array<i32>} : memref<32x128xbf16, #tpu.memory_space<vmem>>, vector<32x128xbf16>,
    } else {
    }
    return
  }
  func.func @transform_0(%arg0: i32, %arg1: i32, %arg2: i32) -> (i32, i32) {
    %c0_i32 = arith.constant 0 : i32
    return %arg0, %arg2 : i32, i32
  }
  func.func @transform_1(%arg0: i32, %arg1: i32, %arg2: i32) -> (i32, i32) {
    %c0_i32 = arith.constant 0 : i32
    return %arg2, %arg1 : i32, i32
  }
  func.func @transform_2(%arg0: i32, %arg1: i32, %arg2: i32) -> (i32, i32) {
    %c0_i32 = arith.constant 0 : i32
    %c0_i32_0 = arith.constant 0 : i32
    return %c0_i32, %arg1 : i32, i32
  }
  func.func @transform_3(%arg0: i32, %arg1: i32, %arg2: i32) -> (i32, i32) {
    %c0_i32 = arith.constant 0 : i32
    %c0_i32_0 = arith.constant 0 : i32
    return %c0_i32, %arg1 : i32, i32
  }
  func.func @transform_4(%arg0: i32, %arg1: i32, %arg2: i32) -> (i32, i32) {
    %c0_i32 = arith.constant 0 : i32
    return %arg0, %arg1 : i32, i32
  }
}

module attributes {stable_mosaic.version = 11 : i64} {
  func.func @_conv_mm_kernel(%arg0: i32, %arg1: i32, %arg2: i32, %arg3: memref<32x384xbf16, #tpu.memory_space<vmem>>, %arg4: memref<384x128xbf16, #tpu.memory_space<vmem>>, %arg5: memref<1x128xf32, #tpu.memory_space<vmem>>, %arg6: memref<1x128xf32, #tpu.memory_space<vmem>>, %arg7: memref<32x128xf32, #tpu.memory_space<vmem>>, %arg8: memref<32x128xbf16, #tpu.memory_space<vmem>>, %arg9: memref<32x128xf32, #tpu.memory_space<vmem>>) attributes {dimension_semantics = [#tpu.dimension_semantics<parallel>, #tpu.dimension_semantics<parallel>, #tpu.dimension_semantics<arbitrary>], iteration_bounds = array<i64: 1, 1, 3>, scalar_prefetch = 0 : i64, scratch_operands = 1 : i64, tpu.core_type = #tpu.core_type<tc>, window_params = [{transform_indices = @transform_0, window_bounds = array<i64: 32, 384>}, {transform_indices = @transform_1, window_bounds = array<i64: 384, 128>}, {transform_indices = @transform_2, window_bounds = array<i64: 1, 128>}, {transform_indices = @transform_3, window_bounds = array<i64: 1, 128>}, {transform_indices = @transform_4, window_bounds = array<i64: 32, 128>}, {transform_indices = @transform_5, window_bounds = array<i64: 32, 128>}]} {
    %c0_i32 = arith.constant 0 : i32
    %0 = arith.cmpi eq, %arg2, %c0_i32 : i32
    %1 = arith.extui %0 : i1 to i32
    %c0_i32_0 = arith.constant 0 : i32
    %2 = arith.cmpi ne, %1, %c0_i32_0 : i32
    scf.if %2 {
      %cst_9 = arith.constant 0.000000e+00 : f32
      %12 = vector.broadcast %cst_9 : f32 to vector<32x128xf32>
      %c0_10 = arith.constant 0 : index
      %c0_11 = arith.constant 0 : index
      %13 = vector.load %arg9[%c0_10, %c0_11] : memref<32x128xf32, #tpu.memory_space<vmem>>, vector<32x128xf32>
      tpu.vector_store %arg9[%c0_10, %c0_11], %12 {strides = array<i32>} : memref<32x128xf32, #tpu.memory_space<vmem>>, vector<32x128xf32>,
    } else {
    }
    %c0 = arith.constant 0 : index
    %c0_1 = arith.constant 0 : index
    %3 = vector.load %arg9[%c0, %c0_1] : memref<32x128xf32, #tpu.memory_space<vmem>>, vector<32x128xf32>
    %c0_2 = arith.constant 0 : index
    %c0_3 = arith.constant 0 : index
    %4 = vector.load %arg3[%c0_2, %c0_3] : memref<32x384xbf16, #tpu.memory_space<vmem>>, vector<32x384xbf16>
    %c0_4 = arith.constant 0 : index
    %c0_5 = arith.constant 0 : index
    %5 = vector.load %arg4[%c0_4, %c0_5] : memref<384x128xbf16, #tpu.memory_space<vmem>>, vector<384x128xbf16>
    %cst = arith.constant dense<0.000000e+00> : vector<32x128xf32>
    %6 = tpu.matmul %4, %5, %cst {dimension_numbers = #tpu.dot_dimension_numbers<[1], [0], [0], [1], [0, 0, 1, 1], [], []>} : vector<32x384xbf16>, vector<384x128xbf16>, vector<32x128xf32> -> vector<32x128xf32>
    %7 = arith.addf %3, %6 : vector<32x128xf32>
    %c0_6 = arith.constant 0 : index
    %c0_7 = arith.constant 0 : index
    %8 = vector.load %arg9[%c0_6, %c0_7] : memref<32x128xf32, #tpu.memory_space<vmem>>, vector<32x128xf32>
    tpu.vector_store %arg9[%c0_6, %c0_7], %7 {strides = array<i32>} : memref<32x128xf32, #tpu.memory_space<vmem>>, vector<32x128xf32>,
    %c2_i32 = arith.constant 2 : i32
    %9 = arith.cmpi eq, %arg2, %c2_i32 : i32
    %10 = arith.extui %9 : i1 to i32
    %c0_i32_8 = arith.constant 0 : i32
    %11 = arith.cmpi ne, %10, %c0_i32_8 : i32
    scf.if %11 {
      %c0_9 = arith.constant 0 : index
      %c0_10 = arith.constant 0 : index
      %12 = vector.load %arg9[%c0_9, %c0_10] : memref<32x128xf32, #tpu.memory_space<vmem>>, vector<32x128xf32>
      %c0_11 = arith.constant 0 : index
      %c0_12 = arith.constant 0 : index
      %13 = vector.load %arg5[%c0_11, %c0_12] : memref<1x128xf32, #tpu.memory_space<vmem>>, vector<1x128xf32>
      %14 = vector.broadcast %13 : vector<1x128xf32> to vector<32x128xf32>
      %15 = arith.mulf %12, %14 : vector<32x128xf32>
      %c0_13 = arith.constant 0 : index
      %c0_14 = arith.constant 0 : index
      %16 = vector.load %arg6[%c0_13, %c0_14] : memref<1x128xf32, #tpu.memory_space<vmem>>, vector<1x128xf32>
      %17 = vector.broadcast %16 : vector<1x128xf32> to vector<32x128xf32>
      %18 = arith.addf %15, %17 : vector<32x128xf32>
      %c0_15 = arith.constant 0 : index
      %c0_16 = arith.constant 0 : index
      %19 = vector.load %arg7[%c0_15, %c0_16] : memref<32x128xf32, #tpu.memory_space<vmem>>, vector<32x128xf32>
      %20 = arith.addf %18, %19 : vector<32x128xf32>
      %cst_17 = arith.constant 0.000000e+00 : f32
      %21 = vector.broadcast %cst_17 : f32 to vector<32x128xf32>
      %22 = arith.maximumf %20, %21 : vector<32x128xf32>
      %23 = arith.truncf %22 : vector<32x128xf32> to vector<32x128xbf16>
      %c0_18 = arith.constant 0 : index
      %c0_19 = arith.constant 0 : index
      %24 = vector.load %arg8[%c0_18, %c0_19] : memref<32x128xbf16, #tpu.memory_space<vmem>>, vector<32x128xbf16>
      tpu.vector_store %arg8[%c0_18, %c0_19], %23 {strides = array<i32>} : memref<32x128xbf16, #tpu.memory_space<vmem>>, vector<32x128xbf16>,
    } else {
    }
    return
  }
  func.func @transform_0(%arg0: i32, %arg1: i32, %arg2: i32) -> (i32, i32) {
    %c0_i32 = arith.constant 0 : i32
    return %arg0, %arg2 : i32, i32
  }
  func.func @transform_1(%arg0: i32, %arg1: i32, %arg2: i32) -> (i32, i32) {
    %c0_i32 = arith.constant 0 : i32
    return %arg2, %arg1 : i32, i32
  }
  func.func @transform_2(%arg0: i32, %arg1: i32, %arg2: i32) -> (i32, i32) {
    %c0_i32 = arith.constant 0 : i32
    %c0_i32_0 = arith.constant 0 : i32
    return %c0_i32, %arg1 : i32, i32
  }
  func.func @transform_3(%arg0: i32, %arg1: i32, %arg2: i32) -> (i32, i32) {
    %c0_i32 = arith.constant 0 : i32
    %c0_i32_0 = arith.constant 0 : i32
    return %c0_i32, %arg1 : i32, i32
  }
  func.func @transform_4(%arg0: i32, %arg1: i32, %arg2: i32) -> (i32, i32) {
    %c0_i32 = arith.constant 0 : i32
    return %arg0, %arg1 : i32, i32
  }
  func.func @transform_5(%arg0: i32, %arg1: i32, %arg2: i32) -> (i32, i32) {
    %c0_i32 = arith.constant 0 : i32
    return %arg0, %arg1 : i32, i32
  }
}

module attributes {stable_mosaic.version = 11 : i64} {
  func.func @_conv_mm_kernel_single(%arg0: i32, %arg1: i32, %arg2: memref<32x128xbf16, #tpu.memory_space<vmem>>, %arg3: memref<128x128xbf16, #tpu.memory_space<vmem>>, %arg4: memref<1x128xf32, #tpu.memory_space<vmem>>, %arg5: memref<1x128xf32, #tpu.memory_space<vmem>>, %arg6: memref<32x128xf32, #tpu.memory_space<vmem>>) attributes {dimension_semantics = [#tpu.dimension_semantics<parallel>, #tpu.dimension_semantics<parallel>], iteration_bounds = array<i64: 1, 1>, scalar_prefetch = 0 : i64, scratch_operands = 0 : i64, tpu.core_type = #tpu.core_type<tc>, window_params = [{transform_indices = @transform_0, window_bounds = array<i64: 32, 128>}, {transform_indices = @transform_1, window_bounds = array<i64: 128, 128>}, {transform_indices = @transform_2, window_bounds = array<i64: 1, 128>}, {transform_indices = @transform_3, window_bounds = array<i64: 1, 128>}, {transform_indices = @transform_4, window_bounds = array<i64: 32, 128>}]} {
    %c0 = arith.constant 0 : index
    %c0_0 = arith.constant 0 : index
    %0 = vector.load %arg2[%c0, %c0_0] : memref<32x128xbf16, #tpu.memory_space<vmem>>, vector<32x128xbf16>
    %c0_1 = arith.constant 0 : index
    %c0_2 = arith.constant 0 : index
    %1 = vector.load %arg3[%c0_1, %c0_2] : memref<128x128xbf16, #tpu.memory_space<vmem>>, vector<128x128xbf16>
    %cst = arith.constant dense<0.000000e+00> : vector<32x128xf32>
    %2 = tpu.matmul %0, %1, %cst {dimension_numbers = #tpu.dot_dimension_numbers<[1], [0], [0], [1], [0, 0, 1, 1], [], []>} : vector<32x128xbf16>, vector<128x128xbf16>, vector<32x128xf32> -> vector<32x128xf32>
    %c0_3 = arith.constant 0 : index
    %c0_4 = arith.constant 0 : index
    %3 = vector.load %arg4[%c0_3, %c0_4] : memref<1x128xf32, #tpu.memory_space<vmem>>, vector<1x128xf32>
    %4 = vector.broadcast %3 : vector<1x128xf32> to vector<32x128xf32>
    %5 = arith.mulf %2, %4 : vector<32x128xf32>
    %c0_5 = arith.constant 0 : index
    %c0_6 = arith.constant 0 : index
    %6 = vector.load %arg5[%c0_5, %c0_6] : memref<1x128xf32, #tpu.memory_space<vmem>>, vector<1x128xf32>
    %7 = vector.broadcast %6 : vector<1x128xf32> to vector<32x128xf32>
    %8 = arith.addf %5, %7 : vector<32x128xf32>
    %c0_7 = arith.constant 0 : index
    %c0_8 = arith.constant 0 : index
    %9 = vector.load %arg6[%c0_7, %c0_8] : memref<32x128xf32, #tpu.memory_space<vmem>>, vector<32x128xf32>
    tpu.vector_store %arg6[%c0_7, %c0_8], %8 {strides = array<i32>} : memref<32x128xf32, #tpu.memory_space<vmem>>, vector<32x128xf32>,
    return
  }
  func.func @transform_0(%arg0: i32, %arg1: i32) -> (i32, i32) {
    %c0_i32 = arith.constant 0 : i32
    %c0_i32_0 = arith.constant 0 : i32
    return %arg0, %c0_i32 : i32, i32
  }
  func.func @transform_1(%arg0: i32, %arg1: i32) -> (i32, i32) {
    %c0_i32 = arith.constant 0 : i32
    %c0_i32_0 = arith.constant 0 : i32
    return %c0_i32, %arg1 : i32, i32
  }
  func.func @transform_2(%arg0: i32, %arg1: i32) -> (i32, i32) {
    %c0_i32 = arith.constant 0 : i32
    %c0_i32_0 = arith.constant 0 : i32
    return %c0_i32, %arg1 : i32, i32
  }
  func.func @transform_3(%arg0: i32, %arg1: i32) -> (i32, i32) {
    %c0_i32 = arith.constant 0 : i32
    %c0_i32_0 = arith.constant 0 : i32
    return %c0_i32, %arg1 : i32, i32
  }
  func.func @transform_4(%arg0: i32, %arg1: i32) -> (i32, i32) {
    %c0_i32 = arith.constant 0 : i32
    return %arg0, %arg1 : i32, i32
  }
}

module attributes {stable_mosaic.version = 11 : i64} {
  func.func @_conv_mm_kernel_single(%arg0: i32, %arg1: i32, %arg2: memref<32x1224xbf16, #tpu.memory_space<vmem>>, %arg3: memref<1224x8xbf16, #tpu.memory_space<vmem>>, %arg4: memref<1x8xf32, #tpu.memory_space<vmem>>, %arg5: memref<1x8xf32, #tpu.memory_space<vmem>>, %arg6: memref<32x8xf32, #tpu.memory_space<vmem>>) attributes {dimension_semantics = [#tpu.dimension_semantics<parallel>, #tpu.dimension_semantics<parallel>], iteration_bounds = array<i64: 1, 1>, scalar_prefetch = 0 : i64, scratch_operands = 0 : i64, tpu.core_type = #tpu.core_type<tc>, window_params = [{transform_indices = @transform_0, window_bounds = array<i64: 32, 1224>}, {transform_indices = @transform_1, window_bounds = array<i64: 1224, 8>}, {transform_indices = @transform_2, window_bounds = array<i64: 1, 8>}, {transform_indices = @transform_3, window_bounds = array<i64: 1, 8>}, {transform_indices = @transform_4, window_bounds = array<i64: 32, 8>}]} {
    %c0 = arith.constant 0 : index
    %c0_0 = arith.constant 0 : index
    %0 = vector.load %arg2[%c0, %c0_0] : memref<32x1224xbf16, #tpu.memory_space<vmem>>, vector<32x1224xbf16>
    %c0_1 = arith.constant 0 : index
    %c0_2 = arith.constant 0 : index
    %1 = vector.load %arg3[%c0_1, %c0_2] : memref<1224x8xbf16, #tpu.memory_space<vmem>>, vector<1224x8xbf16>
    %cst = arith.constant dense<0.000000e+00> : vector<32x8xf32>
    %2 = tpu.matmul %0, %1, %cst {dimension_numbers = #tpu.dot_dimension_numbers<[1], [0], [0], [1], [0, 0, 1, 1], [], []>} : vector<32x1224xbf16>, vector<1224x8xbf16>, vector<32x8xf32> -> vector<32x8xf32>
    %c0_3 = arith.constant 0 : index
    %c0_4 = arith.constant 0 : index
    %3 = vector.load %arg4[%c0_3, %c0_4] : memref<1x8xf32, #tpu.memory_space<vmem>>, vector<1x8xf32>
    %4 = vector.broadcast %3 : vector<1x8xf32> to vector<32x8xf32>
    %5 = arith.mulf %2, %4 : vector<32x8xf32>
    %c0_5 = arith.constant 0 : index
    %c0_6 = arith.constant 0 : index
    %6 = vector.load %arg5[%c0_5, %c0_6] : memref<1x8xf32, #tpu.memory_space<vmem>>, vector<1x8xf32>
    %7 = vector.broadcast %6 : vector<1x8xf32> to vector<32x8xf32>
    %8 = arith.addf %5, %7 : vector<32x8xf32>
    %cst_7 = arith.constant 0.000000e+00 : f32
    %9 = vector.broadcast %cst_7 : f32 to vector<32x8xf32>
    %10 = arith.maximumf %8, %9 : vector<32x8xf32>
    %c0_8 = arith.constant 0 : index
    %c0_9 = arith.constant 0 : index
    %11 = vector.load %arg6[%c0_8, %c0_9] : memref<32x8xf32, #tpu.memory_space<vmem>>, vector<32x8xf32>
    tpu.vector_store %arg6[%c0_8, %c0_9], %10 {strides = array<i32>} : memref<32x8xf32, #tpu.memory_space<vmem>>, vector<32x8xf32>,
    return
  }
  func.func @transform_0(%arg0: i32, %arg1: i32) -> (i32, i32) {
    %c0_i32 = arith.constant 0 : i32
    %c0_i32_0 = arith.constant 0 : i32
    return %arg0, %c0_i32 : i32, i32
  }
  func.func @transform_1(%arg0: i32, %arg1: i32) -> (i32, i32) {
    %c0_i32 = arith.constant 0 : i32
    %c0_i32_0 = arith.constant 0 : i32
    return %c0_i32, %arg1 : i32, i32
  }
  func.func @transform_2(%arg0: i32, %arg1: i32) -> (i32, i32) {
    %c0_i32 = arith.constant 0 : i32
    %c0_i32_0 = arith.constant 0 : i32
    return %c0_i32, %arg1 : i32, i32
  }
  func.func @transform_3(%arg0: i32, %arg1: i32) -> (i32, i32) {
    %c0_i32 = arith.constant 0 : i32
    %c0_i32_0 = arith.constant 0 : i32
    return %c0_i32, %arg1 : i32, i32
  }
  func.func @transform_4(%arg0: i32, %arg1: i32) -> (i32, i32) {
    %c0_i32 = arith.constant 0 : i32
    return %arg0, %arg1 : i32, i32
  }
}

module attributes {stable_mosaic.version = 11 : i64} {
  func.func @_strip_sum_kernel(%arg0: i32, %arg1: memref<1x11x152xf32, #tpu.memory_space<vmem>>, %arg2: memref<8x32xf32, #tpu.memory_space<vmem>>, %arg3: memref<16x32xf32, #tpu.memory_space<vmem>>, %arg4: memref<1x32xf32, #tpu.memory_space<vmem>>, %arg5: memref<1x4x32xf32, #tpu.memory_space<vmem>>) attributes {dimension_semantics = [#tpu.dimension_semantics<parallel>], iteration_bounds = array<i64: 2>, scalar_prefetch = 0 : i64, scratch_operands = 0 : i64, tpu.core_type = #tpu.core_type<tc>, window_params = [{transform_indices = @transform_0, window_bounds = array<i64: 1, 11, 152>}, {pipeline_mode = #tpu.pipeline_mode<synchronous>, transform_indices = @transform_1, window_bounds = array<i64: 8, 32>}, {pipeline_mode = #tpu.pipeline_mode<synchronous>, transform_indices = @transform_2, window_bounds = array<i64: 16, 32>}, {pipeline_mode = #tpu.pipeline_mode<synchronous>, transform_indices = @transform_3, window_bounds = array<i64: 1, 32>}, {transform_indices = @transform_4, window_bounds = array<i64: 1, 4, 32>}]} {
    %c0 = arith.constant 0 : index
    %c0_0 = arith.constant 0 : index
    %c0_1 = arith.constant 0 : index
    %0 = vector.load %arg1[%c0, %c0_0, %c0_1] : memref<1x11x152xf32, #tpu.memory_space<vmem>>, vector<1x11x152xf32>
    %1 = vector.shape_cast %0 : vector<1x11x152xf32> to vector<11x152xf32>
    %c0_2 = arith.constant 0 : index
    %c0_3 = arith.constant 0 : index
    %2 = vector.load %arg2[%c0_2, %c0_3] : memref<8x32xf32, #tpu.memory_space<vmem>>, vector<8x32xf32>
    %c0_4 = arith.constant 0 : index
    %c0_5 = arith.constant 0 : index
    %3 = vector.load %arg3[%c0_4, %c0_5] : memref<16x32xf32, #tpu.memory_space<vmem>>, vector<16x32xf32>
    %cst = arith.constant 0.000000e+00 : f32
    %4 = vector.broadcast %cst : f32 to vector<4x32xf32>
    %5 = vector.extract_strided_slice %1 {offsets = [0, 56], sizes = [11, 32], strides = [1, 1]} : vector<11x152xf32> to vector<11x32xf32>
    %6 = vector.extract_strided_slice %5 {offsets = [0, 0], sizes = [4, 32], strides = [1, 1]} : vector<11x32xf32> to vector<4x32xf32>
    %7 = vector.extract_strided_slice %2 {offsets = [0, 0], sizes = [1, 32], strides = [1, 1]} : vector<8x32xf32> to vector<1x32xf32>
    %8 = vector.shape_cast %7 : vector<1x32xf32> to vector<32xf32>
    %9 = vector.shape_cast %8 : vector<32xf32> to vector<1x32xf32>
    %10 = vector.broadcast %9 : vector<1x32xf32> to vector<4x32xf32>
    %11 = arith.mulf %6, %10 : vector<4x32xf32>
    %12 = arith.addf %4, %11 : vector<4x32xf32>
    %13 = vector.extract_strided_slice %5 {offsets = [1, 0], sizes = [4, 32], strides = [1, 1]} : vector<11x32xf32> to vector<4x32xf32>
    %14 = vector.extract_strided_slice %2 {offsets = [1, 0], sizes = [1, 32], strides = [1, 1]} : vector<8x32xf32> to vector<1x32xf32>
    %15 = vector.shape_cast %14 : vector<1x32xf32> to vector<32xf32>
    %16 = vector.shape_cast %15 : vector<32xf32> to vector<1x32xf32>
    %17 = vector.broadcast %16 : vector<1x32xf32> to vector<4x32xf32>
    %18 = arith.mulf %13, %17 : vector<4x32xf32>
    %19 = arith.addf %12, %18 : vector<4x32xf32>
    %20 = vector.extract_strided_slice %5 {offsets = [2, 0], sizes = [4, 32], strides = [1, 1]} : vector<11x32xf32> to vector<4x32xf32>
    %21 = vector.extract_strided_slice %2 {offsets = [2, 0], sizes = [1, 32], strides = [1, 1]} : vector<8x32xf32> to vector<1x32xf32>
    %22 = vector.shape_cast %21 : vector<1x32xf32> to vector<32xf32>
    %23 = vector.shape_cast %22 : vector<32xf32> to vector<1x32xf32>
    %24 = vector.broadcast %23 : vector<1x32xf32> to vector<4x32xf32>
    %25 = arith.mulf %20, %24 : vector<4x32xf32>
    %26 = arith.addf %19, %25 : vector<4x32xf32>
    %27 = vector.extract_strided_slice %5 {offsets = [3, 0], sizes = [4, 32], strides = [1, 1]} : vector<11x32xf32> to vector<4x32xf32>
    %28 = vector.extract_strided_slice %2 {offsets = [3, 0], sizes = [1, 32], strides = [1, 1]} : vector<8x32xf32> to vector<1x32xf32>
    %29 = vector.shape_cast %28 : vector<1x32xf32> to vector<32xf32>
    %30 = vector.shape_cast %29 : vector<32xf32> to vector<1x32xf32>
    %31 = vector.broadcast %30 : vector<1x32xf32> to vector<4x32xf32>
    %32 = arith.mulf %27, %31 : vector<4x32xf32>
    %33 = arith.addf %26, %32 : vector<4x32xf32>
    %34 = vector.extract_strided_slice %5 {offsets = [4, 0], sizes = [4, 32], strides = [1, 1]} : vector<11x32xf32> to vector<4x32xf32>
    %35 = vector.extract_strided_slice %2 {offsets = [4, 0], sizes = [1, 32], strides = [1, 1]} : vector<8x32xf32> to vector<1x32xf32>
    %36 = vector.shape_cast %35 : vector<1x32xf32> to vector<32xf32>
    %37 = vector.shape_cast %36 : vector<32xf32> to vector<1x32xf32>
    %38 = vector.broadcast %37 : vector<1x32xf32> to vector<4x32xf32>
    %39 = arith.mulf %34, %38 : vector<4x32xf32>
    %40 = arith.addf %33, %39 : vector<4x32xf32>
    %41 = vector.extract_strided_slice %5 {offsets = [5, 0], sizes = [4, 32], strides = [1, 1]} : vector<11x32xf32> to vector<4x32xf32>
    %42 = vector.extract_strided_slice %2 {offsets = [5, 0], sizes = [1, 32], strides = [1, 1]} : vector<8x32xf32> to vector<1x32xf32>
    %43 = vector.shape_cast %42 : vector<1x32xf32> to vector<32xf32>
    %44 = vector.shape_cast %43 : vector<32xf32> to vector<1x32xf32>
    %45 = vector.broadcast %44 : vector<1x32xf32> to vector<4x32xf32>
    %46 = arith.mulf %41, %45 : vector<4x32xf32>
    %47 = arith.addf %40, %46 : vector<4x32xf32>
    %48 = vector.extract_strided_slice %5 {offsets = [6, 0], sizes = [4, 32], strides = [1, 1]} : vector<11x32xf32> to vector<4x32xf32>
    %49 = vector.extract_strided_slice %2 {offsets = [6, 0], sizes = [1, 32], strides = [1, 1]} : vector<8x32xf32> to vector<1x32xf32>
    %50 = vector.shape_cast %49 : vector<1x32xf32> to vector<32xf32>
    %51 = vector.shape_cast %50 : vector<32xf32> to vector<1x32xf32>
    %52 = vector.broadcast %51 : vector<1x32xf32> to vector<4x32xf32>
    %53 = arith.mulf %48, %52 : vector<4x32xf32>
    %54 = arith.addf %47, %53 : vector<4x32xf32>
    %55 = vector.extract_strided_slice %5 {offsets = [7, 0], sizes = [4, 32], strides = [1, 1]} : vector<11x32xf32> to vector<4x32xf32>
    %56 = vector.extract_strided_slice %2 {offsets = [7, 0], sizes = [1, 32], strides = [1, 1]} : vector<8x32xf32> to vector<1x32xf32>
    %57 = vector.shape_cast %56 : vector<1x32xf32> to vector<32xf32>
    %58 = vector.shape_cast %57 : vector<32xf32> to vector<1x32xf32>
    %59 = vector.broadcast %58 : vector<1x32xf32> to vector<4x32xf32>
    %60 = arith.mulf %55, %59 : vector<4x32xf32>
    %61 = arith.addf %54, %60 : vector<4x32xf32>
    %62 = vector.extract_strided_slice %1 {offsets = [3, 0], sizes = [4, 152], strides = [1, 1]} : vector<11x152xf32> to vector<4x152xf32>
    %63 = vector.extract_strided_slice %62 {offsets = [0, 0], sizes = [4, 32], strides = [1, 1]} : vector<4x152xf32> to vector<4x32xf32>
    %64 = vector.extract_strided_slice %3 {offsets = [0, 0], sizes = [1, 32], strides = [1, 1]} : vector<16x32xf32> to vector<1x32xf32>
    %65 = vector.shape_cast %64 : vector<1x32xf32> to vector<32xf32>
    %66 = vector.shape_cast %65 : vector<32xf32> to vector<1x32xf32>
    %67 = vector.broadcast %66 : vector<1x32xf32> to vector<4x32xf32>
    %68 = arith.mulf %63, %67 : vector<4x32xf32>
    %69 = arith.addf %61, %68 : vector<4x32xf32>
    %70 = vector.extract_strided_slice %62 {offsets = [0, 8], sizes = [4, 32], strides = [1, 1]} : vector<4x152xf32> to vector<4x32xf32>
    %71 = vector.extract_strided_slice %3 {offsets = [1, 0], sizes = [1, 32], strides = [1, 1]} : vector<16x32xf32> to vector<1x32xf32>
    %72 = vector.shape_cast %71 : vector<1x32xf32> to vector<32xf32>
    %73 = vector.shape_cast %72 : vector<32xf32> to vector<1x32xf32>
    %74 = vector.broadcast %73 : vector<1x32xf32> to vector<4x32xf32>
    %75 = arith.mulf %70, %74 : vector<4x32xf32>
    %76 = arith.addf %69, %75 : vector<4x32xf32>
    %77 = vector.extract_strided_slice %62 {offsets = [0, 16], sizes = [4, 32], strides = [1, 1]} : vector<4x152xf32> to vector<4x32xf32>
    %78 = vector.extract_strided_slice %3 {offsets = [2, 0], sizes = [1, 32], strides = [1, 1]} : vector<16x32xf32> to vector<1x32xf32>
    %79 = vector.shape_cast %78 : vector<1x32xf32> to vector<32xf32>
    %80 = vector.shape_cast %79 : vector<32xf32> to vector<1x32xf32>
    %81 = vector.broadcast %80 : vector<1x32xf32> to vector<4x32xf32>
    %82 = arith.mulf %77, %81 : vector<4x32xf32>
    %83 = arith.addf %76, %82 : vector<4x32xf32>
    %84 = vector.extract_strided_slice %62 {offsets = [0, 24], sizes = [4, 32], strides = [1, 1]} : vector<4x152xf32> to vector<4x32xf32>
    %85 = vector.extract_strided_slice %3 {offsets = [3, 0], sizes = [1, 32], strides = [1, 1]} : vector<16x32xf32> to vector<1x32xf32>
    %86 = vector.shape_cast %85 : vector<1x32xf32> to vector<32xf32>
    %87 = vector.shape_cast %86 : vector<32xf32> to vector<1x32xf32>
    %88 = vector.broadcast %87 : vector<1x32xf32> to vector<4x32xf32>
    %89 = arith.mulf %84, %88 : vector<4x32xf32>
    %90 = arith.addf %83, %89 : vector<4x32xf32>
    %91 = vector.extract_strided_slice %62 {offsets = [0, 32], sizes = [4, 32], strides = [1, 1]} : vector<4x152xf32> to vector<4x32xf32>
    %92 = vector.extract_strided_slice %3 {offsets = [4, 0], sizes = [1, 32], strides = [1, 1]} : vector<16x32xf32> to vector<1x32xf32>
    %93 = vector.shape_cast %92 : vector<1x32xf32> to vector<32xf32>
    %94 = vector.shape_cast %93 : vector<32xf32> to vector<1x32xf32>
    %95 = vector.broadcast %94 : vector<1x32xf32> to vector<4x32xf32>
    %96 = arith.mulf %91, %95 : vector<4x32xf32>
    %97 = arith.addf %90, %96 : vector<4x32xf32>
    %98 = vector.extract_strided_slice %62 {offsets = [0, 40], sizes = [4, 32], strides = [1, 1]} : vector<4x152xf32> to vector<4x32xf32>
    %99 = vector.extract_strided_slice %3 {offsets = [5, 0], sizes = [1, 32], strides = [1, 1]} : vector<16x32xf32> to vector<1x32xf32>
    %100 = vector.shape_cast %99 : vector<1x32xf32> to vector<32xf32>
    %101 = vector.shape_cast %100 : vector<32xf32> to vector<1x32xf32>
    %102 = vector.broadcast %101 : vector<1x32xf32> to vector<4x32xf32>
    %103 = arith.mulf %98, %102 : vector<4x32xf32>
    %104 = arith.addf %97, %103 : vector<4x32xf32>
    %105 = vector.extract_strided_slice %62 {offsets = [0, 48], sizes = [4, 32], strides = [1, 1]} : vector<4x152xf32> to vector<4x32xf32>
    %106 = vector.extract_strided_slice %3 {offsets = [6, 0], sizes = [1, 32], strides = [1, 1]} : vector<16x32xf32> to vector<1x32xf32>
    %107 = vector.shape_cast %106 : vector<1x32xf32> to vector<32xf32>
    %108 = vector.shape_cast %107 : vector<32xf32> to vector<1x32xf32>
    %109 = vector.broadcast %108 : vector<1x32xf32> to vector<4x32xf32>
    %110 = arith.mulf %105, %109 : vector<4x32xf32>
    %111 = arith.addf %104, %110 : vector<4x32xf32>
    %112 = vector.extract_strided_slice %62 {offsets = [0, 56], sizes = [4, 32], strides = [1, 1]} : vector<4x152xf32> to vector<4x32xf32>
    %113 = vector.extract_strided_slice %3 {offsets = [7, 0], sizes = [1, 32], strides = [1, 1]} : vector<16x32xf32> to vector<1x32xf32>
    %114 = vector.shape_cast %113 : vector<1x32xf32> to vector<32xf32>
    %115 = vector.shape_cast %114 : vector<32xf32> to vector<1x32xf32>
    %116 = vector.broadcast %115 : vector<1x32xf32> to vector<4x32xf32>
    %117 = arith.mulf %112, %116 : vector<4x32xf32>
    %118 = arith.addf %111, %117 : vector<4x32xf32>
    %119 = vector.extract_strided_slice %62 {offsets = [0, 64], sizes = [4, 32], strides = [1, 1]} : vector<4x152xf32> to vector<4x32xf32>
    %120 = vector.extract_strided_slice %3 {offsets = [8, 0], sizes = [1, 32], strides = [1, 1]} : vector<16x32xf32> to vector<1x32xf32>
    %121 = vector.shape_cast %120 : vector<1x32xf32> to vector<32xf32>
    %122 = vector.shape_cast %121 : vector<32xf32> to vector<1x32xf32>
    %123 = vector.broadcast %122 : vector<1x32xf32> to vector<4x32xf32>
    %124 = arith.mulf %119, %123 : vector<4x32xf32>
    %125 = arith.addf %118, %124 : vector<4x32xf32>
    %126 = vector.extract_strided_slice %62 {offsets = [0, 72], sizes = [4, 32], strides = [1, 1]} : vector<4x152xf32> to vector<4x32xf32>
    %127 = vector.extract_strided_slice %3 {offsets = [9, 0], sizes = [1, 32], strides = [1, 1]} : vector<16x32xf32> to vector<1x32xf32>
    %128 = vector.shape_cast %127 : vector<1x32xf32> to vector<32xf32>
    %129 = vector.shape_cast %128 : vector<32xf32> to vector<1x32xf32>
    %130 = vector.broadcast %129 : vector<1x32xf32> to vector<4x32xf32>
    %131 = arith.mulf %126, %130 : vector<4x32xf32>
    %132 = arith.addf %125, %131 : vector<4x32xf32>
    %133 = vector.extract_strided_slice %62 {offsets = [0, 80], sizes = [4, 32], strides = [1, 1]} : vector<4x152xf32> to vector<4x32xf32>
    %134 = vector.extract_strided_slice %3 {offsets = [10, 0], sizes = [1, 32], strides = [1, 1]} : vector<16x32xf32> to vector<1x32xf32>
    %135 = vector.shape_cast %134 : vector<1x32xf32> to vector<32xf32>
    %136 = vector.shape_cast %135 : vector<32xf32> to vector<1x32xf32>
    %137 = vector.broadcast %136 : vector<1x32xf32> to vector<4x32xf32>
    %138 = arith.mulf %133, %137 : vector<4x32xf32>
    %139 = arith.addf %132, %138 : vector<4x32xf32>
    %140 = vector.extract_strided_slice %62 {offsets = [0, 88], sizes = [4, 32], strides = [1, 1]} : vector<4x152xf32> to vector<4x32xf32>
    %141 = vector.extract_strided_slice %3 {offsets = [11, 0], sizes = [1, 32], strides = [1, 1]} : vector<16x32xf32> to vector<1x32xf32>
    %142 = vector.shape_cast %141 : vector<1x32xf32> to vector<32xf32>
    %143 = vector.shape_cast %142 : vector<32xf32> to vector<1x32xf32>
    %144 = vector.broadcast %143 : vector<1x32xf32> to vector<4x32xf32>
    %145 = arith.mulf %140, %144 : vector<4x32xf32>
    %146 = arith.addf %139, %145 : vector<4x32xf32>
    %147 = vector.extract_strided_slice %62 {offsets = [0, 96], sizes = [4, 32], strides = [1, 1]} : vector<4x152xf32> to vector<4x32xf32>
    %148 = vector.extract_strided_slice %3 {offsets = [12, 0], sizes = [1, 32], strides = [1, 1]} : vector<16x32xf32> to vector<1x32xf32>
    %149 = vector.shape_cast %148 : vector<1x32xf32> to vector<32xf32>
    %150 = vector.shape_cast %149 : vector<32xf32> to vector<1x32xf32>
    %151 = vector.broadcast %150 : vector<1x32xf32> to vector<4x32xf32>
    %152 = arith.mulf %147, %151 : vector<4x32xf32>
    %153 = arith.addf %146, %152 : vector<4x32xf32>
    %154 = vector.extract_strided_slice %62 {offsets = [0, 104], sizes = [4, 32], strides = [1, 1]} : vector<4x152xf32> to vector<4x32xf32>
    %155 = vector.extract_strided_slice %3 {offsets = [13, 0], sizes = [1, 32], strides = [1, 1]} : vector<16x32xf32> to vector<1x32xf32>
    %156 = vector.shape_cast %155 : vector<1x32xf32> to vector<32xf32>
    %157 = vector.shape_cast %156 : vector<32xf32> to vector<1x32xf32>
    %158 = vector.broadcast %157 : vector<1x32xf32> to vector<4x32xf32>
    %159 = arith.mulf %154, %158 : vector<4x32xf32>
    %160 = arith.addf %153, %159 : vector<4x32xf32>
    %161 = vector.extract_strided_slice %62 {offsets = [0, 112], sizes = [4, 32], strides = [1, 1]} : vector<4x152xf32> to vector<4x32xf32>
    %162 = vector.extract_strided_slice %3 {offsets = [14, 0], sizes = [1, 32], strides = [1, 1]} : vector<16x32xf32> to vector<1x32xf32>
    %163 = vector.shape_cast %162 : vector<1x32xf32> to vector<32xf32>
    %164 = vector.shape_cast %163 : vector<32xf32> to vector<1x32xf32>
    %165 = vector.broadcast %164 : vector<1x32xf32> to vector<4x32xf32>
    %166 = arith.mulf %161, %165 : vector<4x32xf32>
    %167 = arith.addf %160, %166 : vector<4x32xf32>
    %168 = vector.extract_strided_slice %62 {offsets = [0, 120], sizes = [4, 32], strides = [1, 1]} : vector<4x152xf32> to vector<4x32xf32>
    %169 = vector.extract_strided_slice %3 {offsets = [15, 0], sizes = [1, 32], strides = [1, 1]} : vector<16x32xf32> to vector<1x32xf32>
    %170 = vector.shape_cast %169 : vector<1x32xf32> to vector<32xf32>
    %171 = vector.shape_cast %170 : vector<32xf32> to vector<1x32xf32>
    %172 = vector.broadcast %171 : vector<1x32xf32> to vector<4x32xf32>
    %173 = arith.mulf %168, %172 : vector<4x32xf32>
    %174 = arith.addf %167, %173 : vector<4x32xf32>
    %c0_6 = arith.constant 0 : index
    %c0_7 = arith.constant 0 : index
    %175 = vector.load %arg4[%c0_6, %c0_7] : memref<1x32xf32, #tpu.memory_space<vmem>>, vector<1x32xf32>
    %176 = vector.broadcast %175 : vector<1x32xf32> to vector<4x32xf32>
    %177 = arith.addf %174, %176 : vector<4x32xf32>
    %c0_8 = arith.constant 0 : index
    %c0_9 = arith.constant 0 : index
    %c0_10 = arith.constant 0 : index
    %178 = vector.load %arg5[%c0_8, %c0_9, %c0_10] : memref<1x4x32xf32, #tpu.memory_space<vmem>>, vector<1x4x32xf32>
    %179 = vector.shape_cast %178 : vector<1x4x32xf32> to vector<4x32xf32>
    %180 = vector.shape_cast %177 : vector<4x32xf32> to vector<1x4x32xf32>
    tpu.vector_store %arg5[%c0_8, %c0_9, %c0_10], %180 {strides = array<i32>} : memref<1x4x32xf32, #tpu.memory_space<vmem>>, vector<1x4x32xf32>,
    return
  }
  func.func @transform_0(%arg0: i32) -> (i32, i32, i32) {
    %c0_i32 = arith.constant 0 : i32
    %c0_i32_0 = arith.constant 0 : i32
    %c0_i32_1 = arith.constant 0 : i32
    return %arg0, %c0_i32, %c0_i32_0 : i32, i32, i32
  }
  func.func @transform_1(%arg0: i32) -> (i32, i32) {
    %c0_i32 = arith.constant 0 : i32
    %c0_i32_0 = arith.constant 0 : i32
    %c0_i32_1 = arith.constant 0 : i32
    return %c0_i32, %c0_i32_0 : i32, i32
  }
  func.func @transform_2(%arg0: i32) -> (i32, i32) {
    %c0_i32 = arith.constant 0 : i32
    %c0_i32_0 = arith.constant 0 : i32
    %c0_i32_1 = arith.constant 0 : i32
    return %c0_i32, %c0_i32_0 : i32, i32
  }
  func.func @transform_3(%arg0: i32) -> (i32, i32) {
    %c0_i32 = arith.constant 0 : i32
    %c0_i32_0 = arith.constant 0 : i32
    %c0_i32_1 = arith.constant 0 : i32
    return %c0_i32, %c0_i32_0 : i32, i32
  }
  func.func @transform_4(%arg0: i32) -> (i32, i32, i32) {
    %c0_i32 = arith.constant 0 : i32
    %c0_i32_0 = arith.constant 0 : i32
    %c0_i32_1 = arith.constant 0 : i32
    return %arg0, %c0_i32, %c0_i32_0 : i32, i32, i32
  }
}

module attributes {stable_mosaic.version = 11 : i64} {
  func.func @_ln_mlp_kernel(%arg0: i32, %arg1: memref<32x8xf32, #tpu.memory_space<vmem>>, %arg2: memref<32x8xf32, #tpu.memory_space<vmem>>, %arg3: memref<1x8xf32, #tpu.memory_space<vmem>>, %arg4: memref<1x8xf32, #tpu.memory_space<vmem>>, %arg5: memref<8x16xbf16, #tpu.memory_space<vmem>>, %arg6: memref<1x16xf32, #tpu.memory_space<vmem>>, %arg7: memref<16x8xbf16, #tpu.memory_space<vmem>>, %arg8: memref<1x8xf32, #tpu.memory_space<vmem>>, %arg9: memref<32x8xf32, #tpu.memory_space<vmem>>) attributes {dimension_semantics = [#tpu.dimension_semantics<parallel>], iteration_bounds = array<i64: 1>, scalar_prefetch = 0 : i64, scratch_operands = 0 : i64, tpu.core_type = #tpu.core_type<tc>, window_params = [{transform_indices = @transform_0, window_bounds = array<i64: 32, 8>}, {transform_indices = @transform_1, window_bounds = array<i64: 32, 8>}, {pipeline_mode = #tpu.pipeline_mode<synchronous>, transform_indices = @transform_2, window_bounds = array<i64: 1, 8>}, {pipeline_mode = #tpu.pipeline_mode<synchronous>, transform_indices = @transform_3, window_bounds = array<i64: 1, 8>}, {pipeline_mode = #tpu.pipeline_mode<synchronous>, transform_indices = @transform_4, window_bounds = array<i64: 8, 16>}, {pipeline_mode = #tpu.pipeline_mode<synchronous>, transform_indices = @transform_5, window_bounds = array<i64: 1, 16>}, {pipeline_mode = #tpu.pipeline_mode<synchronous>, transform_indices = @transform_6, window_bounds = array<i64: 16, 8>}, {pipeline_mode = #tpu.pipeline_mode<synchronous>, transform_indices = @transform_7, window_bounds = array<i64: 1, 8>}, {transform_indices = @transform_8, window_bounds = array<i64: 32, 8>}]} {
    %c0 = arith.constant 0 : index
    %c0_0 = arith.constant 0 : index
    %0 = vector.load %arg1[%c0, %c0_0] : memref<32x8xf32, #tpu.memory_space<vmem>>, vector<32x8xf32>
    %cst = arith.constant dense<0.000000e+00> : vector<32xf32>
    %1 = vector.multi_reduction <add>, %0, %cst [1] : vector<32x8xf32> to vector<32xf32>
    %2 = vector.shape_cast %1 : vector<32xf32> to vector<32x1xf32>
    %cst_1 = arith.constant 8.000000e+00 : f32
    %3 = vector.broadcast %cst_1 : f32 to vector<32x1xf32>
    %4 = arith.divf %2, %3 : vector<32x1xf32>
    %5 = vector.broadcast %4 : vector<32x1xf32> to vector<32x8xf32>
    %6 = arith.subf %0, %5 : vector<32x8xf32>
    %7 = arith.mulf %6, %6 : vector<32x8xf32>
    %cst_2 = arith.constant dense<0.000000e+00> : vector<32xf32>
    %8 = vector.multi_reduction <add>, %7, %cst_2 [1] : vector<32x8xf32> to vector<32xf32>
    %9 = vector.shape_cast %8 : vector<32xf32> to vector<32x1xf32>
    %cst_3 = arith.constant 8.000000e+00 : f32
    %10 = vector.broadcast %cst_3 : f32 to vector<32x1xf32>
    %11 = arith.divf %9, %10 : vector<32x1xf32>
    %12 = vector.broadcast %4 : vector<32x1xf32> to vector<32x8xf32>
    %13 = arith.subf %0, %12 : vector<32x8xf32>
    %cst_4 = arith.constant 9.99999997E-7 : f32
    %14 = vector.broadcast %cst_4 : f32 to vector<32x1xf32>
    %15 = arith.addf %11, %14 : vector<32x1xf32>
    %16 = math.rsqrt %15 : vector<32x1xf32>
    %17 = vector.broadcast %16 : vector<32x1xf32> to vector<32x8xf32>
    %18 = arith.mulf %13, %17 : vector<32x8xf32>
    %c0_5 = arith.constant 0 : index
    %c0_6 = arith.constant 0 : index
    %19 = vector.load %arg3[%c0_5, %c0_6] : memref<1x8xf32, #tpu.memory_space<vmem>>, vector<1x8xf32>
    %20 = vector.broadcast %19 : vector<1x8xf32> to vector<32x8xf32>
    %21 = arith.mulf %18, %20 : vector<32x8xf32>
    %c0_7 = arith.constant 0 : index
    %c0_8 = arith.constant 0 : index
    %22 = vector.load %arg4[%c0_7, %c0_8] : memref<1x8xf32, #tpu.memory_space<vmem>>, vector<1x8xf32>
    %23 = vector.broadcast %22 : vector<1x8xf32> to vector<32x8xf32>
    %24 = arith.addf %21, %23 : vector<32x8xf32>
    %25 = arith.truncf %24 : vector<32x8xf32> to vector<32x8xbf16>
    %c0_9 = arith.constant 0 : index
    %c0_10 = arith.constant 0 : index
    %26 = vector.load %arg5[%c0_9, %c0_10] : memref<8x16xbf16, #tpu.memory_space<vmem>>, vector<8x16xbf16>
    %cst_11 = arith.constant dense<0.000000e+00> : vector<32x16xf32>
    %27 = tpu.matmul %25, %26, %cst_11 {dimension_numbers = #tpu.dot_dimension_numbers<[1], [0], [0], [1], [0, 0, 1, 1], [], []>} : vector<32x8xbf16>, vector<8x16xbf16>, vector<32x16xf32> -> vector<32x16xf32>
    %c0_12 = arith.constant 0 : index
    %c0_13 = arith.constant 0 : index
    %28 = vector.load %arg6[%c0_12, %c0_13] : memref<1x16xf32, #tpu.memory_space<vmem>>, vector<1x16xf32>
    %29 = vector.broadcast %28 : vector<1x16xf32> to vector<32x16xf32>
    %30 = arith.addf %27, %29 : vector<32x16xf32>
    %31 = arith.mulf %30, %30 : vector<32x16xf32>
    %32 = arith.mulf %30, %31 : vector<32x16xf32>
    %cst_14 = arith.constant 4.471500e-02 : f32
    %33 = vector.broadcast %cst_14 : f32 to vector<32x16xf32>
    %34 = arith.mulf %33, %32 : vector<32x16xf32>
    %35 = arith.addf %30, %34 : vector<32x16xf32>
    %cst_15 = arith.constant 0.797884583 : f32
    %36 = vector.broadcast %cst_15 : f32 to vector<32x16xf32>
    %37 = arith.mulf %36, %35 : vector<32x16xf32>
    %38 = math.tanh %37 : vector<32x16xf32>
    %cst_16 = arith.constant 1.000000e+00 : f32
    %39 = vector.broadcast %cst_16 : f32 to vector<32x16xf32>
    %40 = arith.addf %39, %38 : vector<32x16xf32>
    %cst_17 = arith.constant 5.000000e-01 : f32
    %41 = vector.broadcast %cst_17 : f32 to vector<32x16xf32>
    %42 = arith.mulf %41, %40 : vector<32x16xf32>
    %43 = arith.mulf %30, %42 : vector<32x16xf32>
    %44 = arith.truncf %43 : vector<32x16xf32> to vector<32x16xbf16>
    %c0_18 = arith.constant 0 : index
    %c0_19 = arith.constant 0 : index
    %45 = vector.load %arg7[%c0_18, %c0_19] : memref<16x8xbf16, #tpu.memory_space<vmem>>, vector<16x8xbf16>
    %cst_20 = arith.constant dense<0.000000e+00> : vector<32x8xf32>
    %46 = tpu.matmul %44, %45, %cst_20 {dimension_numbers = #tpu.dot_dimension_numbers<[1], [0], [0], [1], [0, 0, 1, 1], [], []>} : vector<32x16xbf16>, vector<16x8xbf16>, vector<32x8xf32> -> vector<32x8xf32>
    %c0_21 = arith.constant 0 : index
    %c0_22 = arith.constant 0 : index
    %47 = vector.load %arg8[%c0_21, %c0_22] : memref<1x8xf32, #tpu.memory_space<vmem>>, vector<1x8xf32>
    %48 = vector.broadcast %47 : vector<1x8xf32> to vector<32x8xf32>
    %49 = arith.addf %46, %48 : vector<32x8xf32>
    %c0_23 = arith.constant 0 : index
    %c0_24 = arith.constant 0 : index
    %50 = vector.load %arg2[%c0_23, %c0_24] : memref<32x8xf32, #tpu.memory_space<vmem>>, vector<32x8xf32>
    %51 = arith.negf %49 : vector<32x8xf32>
    %52 = math.exp %51 : vector<32x8xf32>
    %cst_25 = arith.constant 1.000000e+00 : f32
    %53 = vector.broadcast %cst_25 : f32 to vector<32x8xf32>
    %54 = arith.addf %53, %52 : vector<32x8xf32>
    %55 = arith.divf %53, %54 : vector<32x8xf32>
    %56 = arith.mulf %55, %0 : vector<32x8xf32>
    %57 = arith.addf %50, %56 : vector<32x8xf32>
    %c0_26 = arith.constant 0 : index
    %c0_27 = arith.constant 0 : index
    %58 = vector.load %arg9[%c0_26, %c0_27] : memref<32x8xf32, #tpu.memory_space<vmem>>, vector<32x8xf32>
    tpu.vector_store %arg9[%c0_26, %c0_27], %57 {strides = array<i32>} : memref<32x8xf32, #tpu.memory_space<vmem>>, vector<32x8xf32>,
    return
  }
  func.func @transform_0(%arg0: i32) -> (i32, i32) {
    %c0_i32 = arith.constant 0 : i32
    %c0_i32_0 = arith.constant 0 : i32
    return %arg0, %c0_i32 : i32, i32
  }
  func.func @transform_1(%arg0: i32) -> (i32, i32) {
    %c0_i32 = arith.constant 0 : i32
    %c0_i32_0 = arith.constant 0 : i32
    return %arg0, %c0_i32 : i32, i32
  }
  func.func @transform_2(%arg0: i32) -> (i32, i32) {
    %c0_i32 = arith.constant 0 : i32
    %c0_i32_0 = arith.constant 0 : i32
    %c0_i32_1 = arith.constant 0 : i32
    return %c0_i32, %c0_i32_0 : i32, i32
  }
  func.func @transform_3(%arg0: i32) -> (i32, i32) {
    %c0_i32 = arith.constant 0 : i32
    %c0_i32_0 = arith.constant 0 : i32
    %c0_i32_1 = arith.constant 0 : i32
    return %c0_i32, %c0_i32_0 : i32, i32
  }
  func.func @transform_4(%arg0: i32) -> (i32, i32) {
    %c0_i32 = arith.constant 0 : i32
    %c0_i32_0 = arith.constant 0 : i32
    %c0_i32_1 = arith.constant 0 : i32
    return %c0_i32, %c0_i32_0 : i32, i32
  }
  func.func @transform_5(%arg0: i32) -> (i32, i32) {
    %c0_i32 = arith.constant 0 : i32
    %c0_i32_0 = arith.constant 0 : i32
    %c0_i32_1 = arith.constant 0 : i32
    return %c0_i32, %c0_i32_0 : i32, i32
  }
  func.func @transform_6(%arg0: i32) -> (i32, i32) {
    %c0_i32 = arith.constant 0 : i32
    %c0_i32_0 = arith.constant 0 : i32
    %c0_i32_1 = arith.constant 0 : i32
    return %c0_i32, %c0_i32_0 : i32, i32
  }
  func.func @transform_7(%arg0: i32) -> (i32, i32) {
    %c0_i32 = arith.constant 0 : i32
    %c0_i32_0 = arith.constant 0 : i32
    %c0_i32_1 = arith.constant 0 : i32
    return %c0_i32, %c0_i32_0 : i32, i32
  }
  func.func @transform_8(%arg0: i32) -> (i32, i32) {
    %c0_i32 = arith.constant 0 : i32
    %c0_i32_0 = arith.constant 0 : i32
    return %arg0, %c0_i32 : i32, i32
  }
}

</mosaic_0001>

<bundles_post_ra>
// kernel: tile.15
= control target key start
LH: loop header
LB: loop body
LE: loop exit
PB: predicated region body
PF: predicated region fallthrough
CT: control target
= control target key end

     0   :  { %vm43_vm0 = vcmask 1047556   ;;  %vm45_vm1 = vcmask 64512   ;;  %s94_s22 = smov 8   ;;  %s95_s25 = smov 16   ;;  %vm55_vm2 = vcmask 261312   ;;  %vm65_vm3 = vcmask 195712   ;;  %s147_s0 = inlined_call_operand.vmem [shape: f32[8,4,1,1,8], index: 0, kind: input, shape index: {}]   ;;  %s148_s1 = inlined_call_operand.vmem [shape: f32[8,32], index: 1, kind: output, shape index: {}]  }
   0x1   :  { %v83_v0 = vld [vmem:[%s147_s0 + $0x1c] sm:$0xf]  ;;  %v84_v1 = vld [vmem:[%s147_s0 + $0x18] sm:$0xf]  ;;  %v85_v2 = vld [vmem:[%s147_s0 + $0x14] sm:$0xf] }
   0x2   :  { %9 = vst [vmem:[#allocation0 + $0x38] sm:$0xf] %v83_v0  ;;  %14 = vst [vmem:[#allocation0 + $0x30] sm:$0xf] %v84_v1  ;;  %v86_v3 = vld [vmem:[%s147_s0 + $0x10] sm:$0xf] }
   0x3   :  { %19 = vst [vmem:[#allocation0 + $0x28] sm:$0xf] %v85_v2  ;;  %v87_v4 = vld [vmem:[%s147_s0 + $0xc] sm:$0xf]  ;;  %v88_v5 = vld [vmem:[%s147_s0 + $0x8] sm:$0xf] }
   0x4   :  { %24 = vst [vmem:[#allocation0 + $0x20] sm:$0xf] %v86_v3  ;;  %29 = vst [vmem:[#allocation0 + $0x18] sm:$0xf] %v87_v4  ;;  %v89_v6 = vld [vmem:[%s147_s0 + $0x4] sm:$0xf] }
   0x5   :  { %34 = vst [vmem:[#allocation0 + $0x10] sm:$0xf] %v88_v5  ;;  %v39_v7 = vld [vmem:[%s147_s0] sm:$0xf]  ;;  %38 = vst [vmem:[#allocation0 + $0x8] sm:$0xf] %v89_v6 }
   0x6   :  { %40 = vst [vmem:[#allocation0] sm:$0xf] %v39_v7  ;;  %s93_s0 = smov 24   ;;  %vm75_vm4 = vcmask 130112  }
   0xb   :  { %v50_v8 = vld [vmem:[#allocation0 + $0x3] ss:$8 sm:$0xf0]   ;;  %v60_v9 = vld [vmem:[#allocation0 + $0x2] ss:$8 sm:$0xf0]  }
   0xc   :  { %v70_v14 = vld [vmem:[#allocation0 + $0x1] ss:$8 sm:$0xf0]   ;;  %v42_v17 = vld [vmem:[#allocation0] ss:$8 sm:$0xf0]  }
   0xd   :  { %v48_v10 = vld [vmem:[#allocation0 + $0x3] ss:$8 sm:$0xf]   ;;  %v58_v11 = vld [vmem:[#allocation0 + $0x2] ss:$8 sm:$0xf]  }
   0xe   :  { %v52_v12 = vsel %vm43_vm0, %v50_v8, %v48_v10  ;;  %v68_v13 = vld [vmem:[#allocation0 + $0x1] ss:$8 sm:$0xf]   ;;  %v41_v16 = vld [vmem:[#allocation0] ss:$8 sm:$0xf]   ;;  %v62_v18 = vsel %vm43_vm0, %v60_v9, %v58_v11 }
   0xf   :  { %53 = vrot.lane.b32.xlu0 %v52_v12, %s93_s0  ;;  %v72_v15 = vsel %vm43_vm0, %v70_v14, %v68_v13  ;;  %v44_v19 = vsel %vm43_vm0, %v42_v17, %v41_v16 }
  0x10   :  { %73 = vrot.lane.b32.xlu1 %v72_v15, %s94_s22  ;;  %46 = vst.msk [vmem:[%s148_s1] sm:$0xff] %vm45_vm1, %v44_v19  }
  0x13   :  { %63 = vrot.lane.b32.xlu0 %v62_v18, %s95_s25 }
  0x81   :  { %v54_v20 = vpop.permute.xlu0 %53  }
  0x82   :  { %56 = vst.msk [vmem:[%s148_s1] sm:$0xff] %vm55_vm2, %v54_v20   ;;  %v74_v21 = vpop.permute.xlu1 %73  }
  0x85   :  { %v64_v22 = vpop.permute.xlu0 %63  }
  0x86   :  { %66 = vst.msk [vmem:[%s148_s1] sm:$0xff] %vm65_vm3, %v64_v22  }
  0x87   :  { %76 = vst.msk [vmem:[%s148_s1] sm:$0xff] %vm75_vm4, %v74_v21  }

// kernel: tile.22
= control target key start
LH: loop header
LB: loop body
LE: loop exit
PB: predicated region body
PF: predicated region fallthrough
CT: control target
= control target key end

     0   :  { %s22_s0 = inlined_call_operand.vmem [shape: f32[8], index: 0, kind: input, shape index: {}]   ;;  %s23_s1 = inlined_call_operand.vmem [shape: f32[4,1,1,8], index: 1, kind: output, shape index: {}]  }
   0x1   :  { %v4_v0 = vld [vmem:[%s22_s0] ss:$0 sm:$0xff] }
   0x2   :  { %5 = vst [vmem:[%s23_s1] sm:$0xf] %v4_v0 }

// kernel: tile.23
= control target key start
LH: loop header
LB: loop body
LE: loop exit
PB: predicated region body
PF: predicated region fallthrough
CT: control target
= control target key end

     0   :  { %vm8_vm0 = vcmask 64512   ;;  %s40_s8 = smov 8   ;;  %s41_s9 = smov 16   ;;  %vm14_vm1 = vcmask 261312   ;;  %vm20_vm2 = vcmask 195712   ;;  %vm26_vm3 = vcmask 130112   ;;  %s58_s0 = inlined_call_operand.vmem [shape: f32[4,1,1,8], index: 0, kind: input, shape index: {}]   ;;  %s59_s1 = inlined_call_operand.vmem [shape: f32[1,32], index: 1, kind: output, shape index: {}]  }
   0x1   :  { %v5_v0 = vld [vmem:[%s58_s0] sm:$0xf]  ;;  %s39_s0 = smov 24  }
   0x2   :  { %6 = vst [vmem:[#allocation1] sm:$0xf] %v5_v0 }
   0x9   :  { %v11_v1 = vld [vmem:[#allocation1 + $0x3] sm:$0x1]   ;;  %v23_v2 = vld [vmem:[#allocation1 + $0x1] sm:$0x1]   ;;  %v7_v3 = vld [vmem:[#allocation1] sm:$0x1]  }
   0xa   :  { %12 = vrot.lane.b32.xlu0 %v11_v1, %s39_s0  ;;  %24 = vrot.lane.b32.xlu1 %v23_v2, %s40_s8  ;;  %v17_v4 = vld [vmem:[#allocation1 + $0x2] sm:$0x1]   ;;  %9 = vst.msk [vmem:[#allocation0] sm:$0x1] %vm8_vm0, %v7_v3  }
   0xe   :  { %18 = vrot.lane.b32.xlu0 %v17_v4, %s41_s9 }
  0x7c   :  { %v13_v5 = vpop.permute.xlu0 %12   ;;  %v25_v6 = vpop.permute.xlu1 %24  }
  0x7d   :  { %15 = vst.msk [vmem:[#allocation0] sm:$0x1] %vm14_vm1, %v13_v5  }
  0x80   :  { %v19_v7 = vpop.permute.xlu0 %18  }
  0x81   :  { %21 = vst.msk [vmem:[#allocation0] sm:$0x1] %vm20_vm2, %v19_v7  }
  0x82   :  { %27 = vst.msk [vmem:[#allocation0] sm:$0x1] %vm26_vm3, %v25_v6  }
  0x89   :  { %v32_v8 = vld [vmem:[#allocation0] sm:$0x1] }
  0x8a   :  { %35 = vst [vmem:[%s59_s1] sm:$0x1] %v32_v8 }

</bundles_post_ra>
